<compile_context>
chip_gen: v6e
topology: v6e:2x2x1
jax: 0.10.0
libtpu: 0.0.40
codegen_flags: <defaults>
</compile_context>

<pallas_src>
import functools

import jax
import jax.numpy as jnp
from jax.experimental import pallas as pl
from jax.experimental.pallas import tpu as pltpu


# --------------------------------------------------------------------------------------
# Small helpers
# --------------------------------------------------------------------------------------
def _cdiv(a, b):
    return -(-a // b)


def _round_up(a, b):
    return _cdiv(a, b) * b


def _activate(y, activation):
    if activation == "relu":
        return jnp.maximum(y, 0.0)
    if activation == "sine":
        return jnp.sin(y)
    return y  # 'none'


# --------------------------------------------------------------------------------------
# Kernels
# --------------------------------------------------------------------------------------
def _shared_x_kernel(x_ref, w_ref, b_ref, o_ref, *, activation, skip_mode, group, dout):
    # x_ref: (tn, din)           -- shared x, VMEM-resident across the inner g axis
    # w_ref: (1, din, G*dout)    -- G decoders' weights packed along lanes
    # b_ref: (1, 1, G*dout)
    # o_ref: (G, tn, dout)       -- stacked output layout, written directly (no unpack pass)
    x = x_ref[...]
    y = jnp.dot(x, w_ref[0], preferred_element_type=jnp.float32)   # lane-dense MXU matmul
    y = y + b_ref[0].astype(jnp.float32)
    y = _activate(y, activation)
    xs = x.astype(jnp.float32) if skip_mode is not None else None
    for gi in range(group):  # small static unroll: slice + (optional skip) + store only
        yg = y[:, gi * dout:(gi + 1) * dout]
        if skip_mode == "add":
            yg = yg + xs
        elif skip_mode == "mul":
            yg = yg * xs
        o_ref[gi] = yg.astype(o_ref.dtype)


def _per_decoder_kernel(x_ref, w_ref, b_ref, o_ref, *, activation, skip_mode):
    # x_ref: (1, tn, din)  w_ref: (1, din, dout)  b_ref: (1, 1, dout)  o_ref: (1, tn, dout)
    x = x_ref[0]
    y = jnp.dot(x, w_ref[0], preferred_element_type=jnp.float32)
    y = y + b_ref[0].astype(jnp.float32)
    y = _activate(y, activation)
    if skip_mode == "add":
        y = y + x.astype(jnp.float32)
    elif skip_mode == "mul":
        y = y * x.astype(jnp.float32)
    o_ref[0] = y.astype(o_ref.dtype)


# --------------------------------------------------------------------------------------
# Planning
# --------------------------------------------------------------------------------------
def _vmem_budget_bytes():
    """(double-buffered working-set budget, physical VMEM capacity)."""
    try:
        cap = int(pltpu.get_tpu_info().vmem_capacity_bytes)
    except Exception:
        cap = 64 << 20  # conservative (v7x per-TC)
    budget = max(8 << 20, min(cap // 3, 32 << 20))  # v5e/v6e ~32 MiB, v7x ~21 MiB
    return budget, cap


def _plan_tiles(N, num_dec, din, dout, x_isz, w_isz, o_isz, budget, shared):
    """Pick (row tile tn, decoder group G) against the VMEM budget."""
    # ---- decoder group size G (shared-x path only) ----
    G = 1
    if shared:
        cands = []
        for g in range(1, num_dec + 1):
            if num_dec % g:
                continue
            lanes = g * dout
            if lanes > 512:                                   # keep compute slab/unroll sane
                break
            if 2 * (din + 1) * lanes * w_isz > budget // 4:   # weight tile must stay small
                break
            cands.append(g)
        if cands:
            # Prefer a lane-dense (multiple-of-128) slab; then the largest group
            # (fewer groups -> weights resident when num_groups == 1).
            G = max(cands, key=lambda g: ((g * dout) % 128 == 0, g))
    lanes = G * dout

    # ---- row tile tn ----
    fixed = 2 * (din + 1) * lanes * w_isz                       # double-buffered W + bias
    per_row = 2 * (din * x_isz + lanes * o_isz) + lanes * 4     # dbl-buf x/out + f32 y slab
    row_cap = min(4096, max(256, _round_up(N, 8)))              # cap padding waste
    if N >= 512:
        row_cap = min(row_cap, _round_up(_cdiv(N, 2), 8))       # >=2 row tiles (megacore)
    tn = 8
    for cand in (4096, 2048, 1024, 512, 256, 128, 64, 32, 16, 8):
        if cand <= row_cap and fixed + cand * per_row <= budget:
            tn = cand
            break
    return tn, G


def _merge_lora(bl_weight, lora):
    """One-time weight merge (mirrors the PyTorch __init__)."""
    if lora is None:
        return bl_weight
    UV = jnp.einsum("dir,dro->dio", lora["U"], lora["V"])
    if lora["type"] == "sinlora":
        return bl_weight + jnp.sin(lora["omega"] * UV) / lora["g"]
    return bl_weight + UV


# --------------------------------------------------------------------------------------
# Wrapper
# --------------------------------------------------------------------------------------
def inference_batch_linear(
    x,                      # [N, dim_in] (shared across decoders) or [num_decoders, N, dim_in]
    bl_weight,              # [num_decoders, dim_in, dim_out]
    bl_bias,                # [num_decoders, 1, dim_out]
    *,
    activation="relu",      # 'relu' | 'sine' | 'none'
    skip_connection="+",    # '+' | '*' | anything else = no skip
    is_last=True,
    lora=None,              # None or dict(type='sinlora'|'lora', U, V, omega, g)
    decoder_idx=None,       # optional slice selecting a subset of decoders
    compute_dtype=jnp.bfloat16,  # HBM-read/MXU-input dtype; f32 accumulation kept. None=keep.
    out_dtype=None,         # default: original x dtype (matches PyTorch); bf16 halves writes
):
    W = _merge_lora(bl_weight, lora)
    b = bl_bias
    if decoder_idx is not None:          # subset of decoders (slice), as in the PyTorch forward
        W = W[decoder_idx]
        b = b[decoder_idx]
        if x.ndim == 3:
            x = x[decoder_idx]

    num_dec, din, dout = W.shape
    shared = (x.ndim == 2)               # the common SIEDD case: one coord grid, many decoders
    N = x.shape[-2]
    if out_dtype is None:
        out_dtype = x.dtype              # match the PyTorch module's output dtype

    skip_ok = (din == dout) and (skip_connection in ("+", "*"))
    # '+'-skip can be folded into W only when the activation is identity
    # (PyTorch applies the skip AFTER the activation).
    fold_skip = skip_ok and skip_connection == "+" and activation == "none"
    if fold_skip:
        W = W + jnp.eye(din, dtype=W.dtype)[None]   # residual becomes free on the MXU
    if (not skip_ok) or fold_skip:
        skip_mode = None
    else:
        skip_mode = "add" if skip_connection == "+" else "mul"

    if compute_dtype is not None:
        x = x.astype(compute_dtype)
        W = W.astype(compute_dtype)
        b = b.astype(compute_dtype)

    x_isz = jnp.dtype(x.dtype).itemsize
    w_isz = jnp.dtype(W.dtype).itemsize
    o_isz = jnp.dtype(out_dtype).itemsize

    budget, vmem_cap = _vmem_budget_bytes()
    tn, G = _plan_tiles(N, num_dec, din, dout, x_isz, w_isz, o_isz, budget, shared)

    # Pad rows up to a multiple of the row tile (waste < one tile; sliced off at the end).
    Np = _round_up(N, tn)
    pad = Np - N
    if pad:
        pad_width = ((0, pad), (0, 0)) if shared else ((0, 0), (0, pad), (0, 0))
        x = jnp.pad(x, pad_width)
    n_tiles = Np // tn
    num_groups = (num_dec // G) if shared else num_dec

    vmem_limit = int(max(budget + (8 << 20), min(vmem_cap // 2, 64 << 20)))

    # Advisory cost estimate (actual traffic: dtype item sizes, no unpack pass).
    flops = int(2 * num_dec * N * din * dout)
    transcend = int(num_dec * N * dout) if activation == "sine" else 0
    x_bytes = (Np * din if shared else num_dec * Np * din) * x_isz
    w_reads = n_tiles if (shared and num_groups > 1) else 1     # W re-DMA'd per row tile
    bytes_accessed = int(x_bytes
                         + num_dec * din * dout * w_isz * w_reads
                         + num_dec * dout * w_isz
                         + num_dec * Np * dout * o_isz)
    cost = pl.CostEstimate(flops=flops, transcendentals=transcend,
                           bytes_accessed=bytes_accessed)

    if shared:
        # Pack G decoders' weights along lanes -> one lane-dense [tn, G*dout] MXU matmul
        # per step; output written directly in the stacked layout (no post-kernel unpack).
        W_p = (W.reshape(num_groups, G, din, dout)
                 .transpose(0, 2, 1, 3)
                 .reshape(num_groups, din, G * dout))
        b_p = b.reshape(num_groups, G * dout)[:, None, :]

        kernel = functools.partial(_shared_x_kernel, activation=activation,
                                   skip_mode=skip_mode, group=G, dout=dout)
        out = pl.pallas_call(
            kernel,
            out_shape=jax.ShapeDtypeStruct((num_dec, Np, dout), out_dtype),
            grid_spec=pltpu.PrefetchScalarGridSpec(
                num_scalar_prefetch=0,
                # n outer (large parallel axis, megacore shards rows); g inner so the
                # shared x block index is unchanged across decoder groups -> no re-DMA.
                grid=(n_tiles, num_groups),
                in_specs=[
                    pl.BlockSpec((tn, din), lambda n, g: (n, 0)),
                    pl.BlockSpec((1, din, G * dout), lambda n, g: (g, 0, 0)),
                    pl.BlockSpec((1, 1, G * dout), lambda n, g: (g, 0, 0)),
                ],
                out_specs=pl.BlockSpec((G, tn, dout), lambda n, g: (g, n, 0)),
            ),
            compiler_params=pltpu.CompilerParams(
                dimension_semantics=("parallel", "arbitrary"),
                vmem_limit_bytes=vmem_limit),
            cost_estimate=cost,
        )(x, W_p, b_p)
    else:
        # Per-decoder x: one decoder per grid step (no static unroll); W block is resident
        # across the inner row axis.
        # TODO(synk): if this path ever dominates, pack x/W block-diagonally for a single
        # lane-dense matmul per step (wastes MXU FLOPs, which are free while mem-bound).
        kernel = functools.partial(_per_decoder_kernel, activation=activation,
                                   skip_mode=skip_mode)
        out = pl.pallas_call(
            kernel,
            out_shape=jax.ShapeDtypeStruct((num_dec, Np, dout), out_dtype),
            grid_spec=pltpu.PrefetchScalarGridSpec(
                num_scalar_prefetch=0,
                grid=(num_dec, n_tiles),
                in_specs=[
                    pl.BlockSpec((1, tn, din), lambda d, n: (d, n, 0)),
                    pl.BlockSpec((1, din, dout), lambda d, n: (d, 0, 0)),
                    pl.BlockSpec((1, 1, dout), lambda d, n: (d, 0, 0)),
                ],
                out_specs=pl.BlockSpec((1, tn, dout), lambda d, n: (d, n, 0)),
            ),
            compiler_params=pltpu.CompilerParams(
                dimension_semantics=("parallel", "parallel"),
                vmem_limit_bytes=vmem_limit),
            cost_estimate=cost,
        )(x, W, b)

    if pad:
        out = out[:, :N]

    # PyTorch returns torch.stack(out) when is_last and a Python list otherwise. We return
    # the stacked array in both cases (out[i] == list[i]) to avoid num_decoders separate
    # device slices/copies.
    return out


# --------------------------------------------------------------------------------------
# Reference + demo
# --------------------------------------------------------------------------------------
def _reference(x, W, b, activation, skip, skip_ok):
    y = jnp.einsum("dni,dio->dno", x, W) + b
    if activation == "relu":
        y = jnp.maximum(y, 0.0)
    elif activation == "sine":
        y = jnp.sin(y)
    if skip_ok and skip == "+":
        y = y + x
    elif skip_ok and skip == "*":
        y = y * x
    return y


if __name__ == "__main__":
    key = jax.random.PRNGKey(0)
    num_decoders, N, dim_in, dim_out, lora_rank = 4, 512, 32, 32, 4

    k1, k2, k3, k4, k5, k6 = jax.random.split(key, 6)
    coords = jax.random.normal(k1, (N, dim_in), dtype=jnp.float32)                  # shared x
    x3d = jax.random.normal(k2, (num_decoders, N, dim_in), dtype=jnp.float32)       # per-decoder x
    bl_weight = jax.random.normal(k3, (num_decoders, dim_in, dim_out), jnp.float32) * 0.1
    bl_bias = jax.random.normal(k4, (num_decoders, 1, dim_out), jnp.float32) * 0.01
    U = jax.random.normal(k5, (num_decoders, dim_in, lora_rank), jnp.float32) * 0.1
    V = jax.random.normal(k6, (num_decoders, lora_rank, dim_out), jnp.float32) * 0.1
    lora = {"type": "sinlora", "U": U, "V": V, "omega": 30.0, "g": 5.0}

    UV = jnp.einsum("dir,dro->dio", U, V)
    W_merged = bl_weight + jnp.sin(lora["omega"] * UV) / lora["g"]
    x_bcast = jnp.broadcast_to(coords[None], (num_decoders, N, dim_in))

    # --- 1) shared-x path, default bf16 compute (HBM-bound -> ~2x fewer read bytes) ---
    out_shared = inference_batch_linear(
        coords, bl_weight, bl_bias,
        activation="relu", skip_connection="+", is_last=True, lora=lora)
    out_shared = jax.block_until_ready(out_shared)
    ref_shared = _reference(x_bcast, W_merged, bl_bias, "relu", "+", dim_in == dim_out)
    assert out_shared.shape == (num_decoders, N, dim_out)
    assert out_shared.dtype == jnp.float32   # output dtype matches the PyTorch module
    assert jnp.allclose(out_shared, ref_shared, atol=5e-2, rtol=5e-2), "shared-x (bf16) mismatch"

    # --- 2) shared-x, f32 compute, exercises the '+'-skip fold (activation 'none') ---
    out_fold = inference_batch_linear(
        coords, bl_weight, bl_bias,
        activation="none", skip_connection="+", is_last=True, lora=lora,
        compute_dtype=jnp.float32)
    out_fold = jax.block_until_ready(out_fold)
    ref_fold = _reference(x_bcast, W_merged, bl_bias, "none", "+", dim_in == dim_out)
    assert jnp.allclose(out_fold, ref_fold, atol=1e-4, rtol=1e-4), "folded-skip mismatch"

    # --- 3) per-decoder-x path, sine activation, '*' skip, f32 compute ---
    out_3d = inference_batch_linear(
        x3d, bl_weight, bl_bias,
        activation="sine", skip_connection="*", is_last=False, lora=None,
        compute_dtype=jnp.float32)
    out_3d = jax.block_until_ready(out_3d)
    ref_3d = _reference(x3d, bl_weight, bl_bias, "sine", "*", dim_in == dim_out)
    assert out_3d.shape == (num_decoders, N, dim_out)
    assert jnp.allclose(out_3d, ref_3d, atol=1e-4, rtol=1e-4), "per-decoder-x mismatch"

    print("KERNEL_OK")
</pallas_src>

<mosaic_0001>
module attributes {stable_mosaic.version = 11 : i64} {
  func.func @_shared_x_kernel(%arg0: i32, %arg1: i32, %arg2: memref<256x32xbf16, #tpu.memory_space<vmem>>, %arg3: memref<1x32x128xbf16, #tpu.memory_space<vmem>>, %arg4: memref<1x1x128xbf16, #tpu.memory_space<vmem>>, %arg5: memref<4x256x32xf32, #tpu.memory_space<vmem>>) attributes {dimension_semantics = [#tpu.dimension_semantics<parallel>, #tpu.dimension_semantics<arbitrary>], iteration_bounds = array<i64: 2, 1>, scalar_prefetch = 0 : i64, scratch_operands = 0 : i64, tpu.core_type = #tpu.core_type<tc>, window_params = [{transform_indices = @transform_0, window_bounds = array<i64: 256, 32>}, {transform_indices = @transform_1, window_bounds = array<i64: 1, 32, 128>}, {transform_indices = @transform_2, window_bounds = array<i64: 1, 1, 128>}, {transform_indices = @transform_3, window_bounds = array<i64: 4, 256, 32>}]} {
    %c0 = arith.constant 0 : index
    %c0_0 = arith.constant 0 : index
    %0 = vector.load %arg2[%c0, %c0_0] : memref<256x32xbf16, #tpu.memory_space<vmem>>, vector<256x32xbf16>
    %c0_1 = arith.constant 0 : index
    %c0_2 = arith.constant 0 : index
    %c0_3 = arith.constant 0 : index
    %1 = vector.load %arg3[%c0_1, %c0_2, %c0_3] : memref<1x32x128xbf16, #tpu.memory_space<vmem>>, vector<1x32x128xbf16>
    %2 = vector.shape_cast %1 : vector<1x32x128xbf16> to vector<32x128xbf16>
    %cst = arith.constant dense<0.000000e+00> : vector<256x128xf32>
    %3 = tpu.matmul %0, %2, %cst {dimension_numbers = #tpu.dot_dimension_numbers<[1], [0], [0], [1], [0, 0, 1, 1], [], []>} : vector<256x32xbf16>, vector<32x128xbf16>, vector<256x128xf32> -> vector<256x128xf32>
    %c0_4 = arith.constant 0 : index
    %c0_5 = arith.constant 0 : index
    %c0_6 = arith.constant 0 : index
    %4 = vector.load %arg4[%c0_4, %c0_5, %c0_6] : memref<1x1x128xbf16, #tpu.memory_space<vmem>>, vector<1x1x128xbf16>
    %5 = vector.shape_cast %4 : vector<1x1x128xbf16> to vector<1x128xbf16>
    %6 = arith.extf %5 : vector<1x128xbf16> to vector<1x128xf32>
    %7 = vector.broadcast %6 : vector<1x128xf32> to vector<256x128xf32>
    %8 = arith.addf %3, %7 : vector<256x128xf32>
    %cst_7 = arith.constant 0.000000e+00 : f32
    %9 = vector.broadcast %cst_7 : f32 to vector<256x128xf32>
    %10 = arith.maximumf %8, %9 : vector<256x128xf32>
    %11 = arith.extf %0 : vector<256x32xbf16> to vector<256x32xf32>
    %12 = vector.extract_strided_slice %10 {offsets = [0, 0], sizes = [256, 32], strides = [1, 1]} : vector<256x128xf32> to vector<256x32xf32>
    %13 = arith.addf %12, %11 : vector<256x32xf32>
    %c0_8 = arith.constant 0 : index
    %c0_9 = arith.constant 0 : index
    %c0_10 = arith.constant 0 : index
    %14 = vector.load %arg5[%c0_8, %c0_9, %c0_10] : memref<4x256x32xf32, #tpu.memory_space<vmem>>, vector<1x256x32xf32>
    %15 = vector.shape_cast %14 : vector<1x256x32xf32> to vector<256x32xf32>
    %16 = vector.shape_cast %13 : vector<256x32xf32> to vector<1x256x32xf32>
    tpu.vector_store %arg5[%c0_8, %c0_9, %c0_10], %16 {strides = array<i32>} : memref<4x256x32xf32, #tpu.memory_space<vmem>>, vector<1x256x32xf32>,
    %17 = vector.extract_strided_slice %10 {offsets = [0, 32], sizes = [256, 32], strides = [1, 1]} : vector<256x128xf32> to vector<256x32xf32>
    %18 = arith.addf %17, %11 : vector<256x32xf32>
    %c1 = arith.constant 1 : index
    %c0_11 = arith.constant 0 : index
    %c0_12 = arith.constant 0 : index
    %19 = vector.load %arg5[%c1, %c0_11, %c0_12] : memref<4x256x32xf32, #tpu.memory_space<vmem>>, vector<1x256x32xf32>
    %20 = vector.shape_cast %19 : vector<1x256x32xf32> to vector<256x32xf32>
    %21 = vector.shape_cast %18 : vector<256x32xf32> to vector<1x256x32xf32>
    tpu.vector_store %arg5[%c1, %c0_11, %c0_12], %21 {strides = array<i32>} : memref<4x256x32xf32, #tpu.memory_space<vmem>>, vector<1x256x32xf32>,
    %22 = vector.extract_strided_slice %10 {offsets = [0, 64], sizes = [256, 32], strides = [1, 1]} : vector<256x128xf32> to vector<256x32xf32>
    %23 = arith.addf %22, %11 : vector<256x32xf32>
    %c2 = arith.constant 2 : index
    %c0_13 = arith.constant 0 : index
    %c0_14 = arith.constant 0 : index
    %24 = vector.load %arg5[%c2, %c0_13, %c0_14] : memref<4x256x32xf32, #tpu.memory_space<vmem>>, vector<1x256x32xf32>
    %25 = vector.shape_cast %24 : vector<1x256x32xf32> to vector<256x32xf32>
    %26 = vector.shape_cast %23 : vector<256x32xf32> to vector<1x256x32xf32>
    tpu.vector_store %arg5[%c2, %c0_13, %c0_14], %26 {strides = array<i32>} : memref<4x256x32xf32, #tpu.memory_space<vmem>>, vector<1x256x32xf32>,
    %27 = vector.extract_strided_slice %10 {offsets = [0, 96], sizes = [256, 32], strides = [1, 1]} : vector<256x128xf32> to vector<256x32xf32>
    %28 = arith.addf %27, %11 : vector<256x32xf32>
    %c3 = arith.constant 3 : index
    %c0_15 = arith.constant 0 : index
    %c0_16 = arith.constant 0 : index
    %29 = vector.load %arg5[%c3, %c0_15, %c0_16] : memref<4x256x32xf32, #tpu.memory_space<vmem>>, vector<1x256x32xf32>
    %30 = vector.shape_cast %29 : vector<1x256x32xf32> to vector<256x32xf32>
    %31 = vector.shape_cast %28 : vector<256x32xf32> to vector<1x256x32xf32>
    tpu.vector_store %arg5[%c3, %c0_15, %c0_16], %31 {strides = array<i32>} : memref<4x256x32xf32, #tpu.memory_space<vmem>>, vector<1x256x32xf32>,
    return
  }
  func.func @transform_0(%arg0: i32, %arg1: i32) -> (i32, i32) {
    %c0_i32 = arith.constant 0 : i32
    %c0_i32_0 = arith.constant 0 : i32
    return %arg0, %c0_i32 : i32, i32
  }
  func.func @transform_1(%arg0: i32, %arg1: i32) -> (i32, i32, i32) {
    %c0_i32 = arith.constant 0 : i32
    %c0_i32_0 = arith.constant 0 : i32
    %c0_i32_1 = arith.constant 0 : i32
    return %arg1, %c0_i32, %c0_i32_0 : i32, i32, i32
  }
  func.func @transform_2(%arg0: i32, %arg1: i32) -> (i32, i32, i32) {
    %c0_i32 = arith.constant 0 : i32
    %c0_i32_0 = arith.constant 0 : i32
    %c0_i32_1 = arith.constant 0 : i32
    return %arg1, %c0_i32, %c0_i32_0 : i32, i32, i32
  }
  func.func @transform_3(%arg0: i32, %arg1: i32) -> (i32, i32, i32) {
    %c0_i32 = arith.constant 0 : i32
    %c0_i32_0 = arith.constant 0 : i32
    return %arg1, %arg0, %c0_i32 : i32, i32, i32
  }
}

</mosaic_0001>

<bundles_post_ra>
// kernel: tpu_custom_call.1
= control target key start
LH: loop header
LB: loop body
LE: loop exit
PB: predicated region body
PF: predicated region fallthrough
CT: control target
= control target key end

     0   :  { %s2912_s12 = smov 0   ;;  %s2914_s13 = smov 0   ;;  %s4333_s0 = inlined_call_operand.vmem [shape: bf16[512,32], index: 0, kind: input, shape index: {}]   ;;  %s4334_s1 = inlined_call_operand.vmem [shape: bf16[1,32,128], index: 1, kind: input, shape index: {}]   ;;  %s4335_s2 = inlined_call_operand.vmem [shape: bf16[1,1,128], index: 2, kind: input, shape index: {}]   ;;  %s4336_s3 = inlined_call_operand.vmem [shape: f32[4,512,32], index: 3, kind: output, shape index: {}]  }
   0x1   :  { %s2916_s14 = smov 0   ;;  %s2918_s15 = smov 0  }
   0x2   :  { %s2920_s16 = smov 0  }
   0x3 LB: > { %s2232_s17 = sadd.s32 4294967295, %s2887_s16   ;;  %s25_s18 = sadd.s32 1, %s2883_s15  ;;  %s2887_s16 = sphi %s2920_s16, %s13_s16   ;;  %s2883_s15 = sphi %s2918_s15, %s4417_s15   ;;  %s2879_s14 = sphi %s2916_s14, %s4416_s14   ;;  %s2875_s13 = sphi %s2914_s13, %s4415_s13   ;;  %s2871_s12 = sphi %s2912_s12, %s4414_s12  }
   0x4   : > { %p27_p0 = scmp.ge.s32.totalorder %s25_s18, 2  ;;  %s112_s19 = sadd.s32 1, %s2875_s13 }
   0x5   : > { %p122_p1 = scmp.ne.s32.totalorder %s2875_s13, %s2871_s12  ;;  %p123_p2 = scmp.eq.s32.totalorder %s2232_s17, 1 }
   0x6   : > { %s4419_s18 = smov (%p27_p0, %s25_s18), 0  ;;  %p2238_p4 = scmp.ge.s32.totalorder %s2887_s16, 1 }
   0x7   : > { %p2944_p3 = por %p123_p2, %p122_p1  ;;  %s108_s21 = ssub.s32 %s2883_s15, %s4419_s18 }
   0x8   : > { %p170_p5 = scmp.lt.s32.totalorder %s2887_s16, 3  ;;  %p110_p6 = scmp.eq.s32.totalorder %s108_s21, 0 }
   0xa   : > { %p171_p7 = pnand %p2238_p4, %p170_p5 }
   0xb   : > { %s2953_s22 = scalar_select %p110_p6, %s2875_s13, %s112_s19  }
   0xc   : > { %174 = sbr.rel (%p171_p7) target bundleno = 547 (0x223), region = 32 }
  0x11   : > { %v2719_v0 = vld [vmem:[%s4334_s1 + $0x8] sm:$0xff]   ;;  %s2240_s25 = sshll.u32 %s2879_s14, 5  ;;  %v2720_v1 = vld [vmem:[%s4334_s1] sm:$0xff]   ;;  %vm352_vm0 = vcmask 261120   ;;  %s2889_s5 = smov 32  }
  0x12   : > { %p202_p8 = scmp.lt.s32.totalorder %s2240_s25, 63  ;;  %2396 = vmatprep.subr.bf16.mxu0 %v2719_v0  ;;  %2432 = vmatprep.subr.bf16.mxu1 %v2719_v0  ;;  %s2890_s6 = smov 64  }
  0x13   : > { %2397 = vmatpush3.bf16.msra.mxu0 %v2719_v0  ;;  %2434 = vmatpush3.bf16.msra.mxu1 %v2719_v0  ;;  %s2891_s7 = smov 96   ;;  %s198_s10 = sand.u32 1, %s2871_s12  }
  0x14   : > { %s4421_s25 = smov (!%p202_p8, %s2240_s25), 63  ;;  %2398 = vmatprep.subr.bf16.mxu0 %v2720_v1  ;;  %2433 = vmatprep.subr.bf16.mxu1 %v2720_v1  ;;  %s2239_s11 = sshll.u32 %s198_s10, 10 }
  0x15   : > { %s2241_s28 = sshll.u32 %s4421_s25, 2  ;;  %s3304_s12 = scalar_lea.vmem [#allocation2], %s2239_s11 }
  0x16   : > { %s2965_s4 = scalar_lea.vmem %s4333_s0, %s2241_s28  ;;  %s2377_s17 = sshll.u32 (%p2944_p3), %s2879_s14, 8 }
  0x17   : > { %2399 = vmatpush3.bf16.msra.mxu0 %v2720_v1  ;;  %2435 = vmatpush3.bf16.msra.mxu1 %v2720_v1  ;;  %v2968_v2 = vld [vmem:[%s2965_s4] sm:$0xff]   ;;  %v2974_v4 = vld [vmem:[%s2965_s4 + $0x8] sm:$0xff]   ;;  %v2982_v8 = vld [vmem:[%s2965_s4 + $0x10] sm:$0xff]   ;;  %s4063_s23 = scalar_lea.vmem (%p2944_p3), %s4336_s3, %s2377_s17 }
  0x18   : > { %v2971_v3 = vld [vmem:[%s2965_s4 + $0x40] sm:$0xff]   ;;  %v594_v5 = vunpack.c.l.bf16 %v2968_v2  ;;  %v4361_v6 = vunpack.c.h.bf16 %v2968_v2  ;;  %v2979_v7 = vld [vmem:[%s2965_s4 + $0x48] sm:$0xff]   ;;  %v2985_v9 = vld [vmem:[%s2965_s4 + $0x50] sm:$0xff]   ;;  %2400 = vmatprep.mubr.msk.bf16.mxu0 %vm352_vm0, %v2968_v2  ;;  %v596_v10 = vunpack.c.l.bf16 %v2974_v4  ;;  %v597_v11 = vunpack.c.h.bf16 %v2974_v4 }
  0x19   : > { %2416 = vmatprep.mubr.msk.bf16.mxu1 %vm352_vm0, %v2971_v3  ;;  %v2994_v12 = vld [vmem:[%s2965_s4 + $0x18] sm:$0xff]   ;;  %v4358_v13 = vunpack.c.l.bf16 %v2982_v8  ;;  %v4354_v14 = vunpack.c.h.bf16 %v2982_v8  ;;  %v3009_v16 = vld [vmem:[%s2965_s4 + $0x28] sm:$0xff]   ;;  %v3012_v17 = vld [vmem:[%s2965_s4 + $0x20] sm:$0xff]   ;;  %v610_v37 = vunpack.c.l.bf16 %v2971_v3  ;;  %v4362_v38 = vunpack.c.h.bf16 %v2971_v3 }
  0x1a   : > { %2401 = vmatmul.mubr.msk.bf16.vlgmr.msra.gmra.mxu0 %vm352_vm0, %v2974_v4  ;;  %v3004_v15 = vpack.i.bf16 %v4361_v6, %v594_v5  ;;  %2417 = vmatmul.mubr.msk.bf16.vlgmr.msra.gmra.mxu1 %vm352_vm0, %v2979_v7  ;;  %v3025_v19 = vld [vmem:[%s2965_s4 + $0x58] sm:$0xff]   ;;  %v4360_v20 = vunpack.c.l.bf16 %v2994_v12  ;;  %v4356_v21 = vunpack.c.h.bf16 %v2994_v12  ;;  %v3035_v22 = vpack.i.bf16 %v597_v11, %v596_v10  ;;  %v3038_v23 = vld [vmem:[%s2965_s4 + $0x60] sm:$0xff]   ;;  %v3047_v28 = vld [vmem:[%s2965_s4 + $0x30] sm:$0xff]  }
  0x1b   : > { %v3018_v18 = vpack.i.bf16 %v4354_v14, %v4358_v13  ;;  %2404 = vmatprep.mubr.msk.bf16.mxu0 %vm352_vm0, %v2982_v8  ;;  %2420 = vmatprep.mubr.msk.bf16.mxu1 %vm352_vm0, %v2985_v9  ;;  %v4352_v24 = vunpack.c.l.bf16 %v3009_v16  ;;  %v4348_v25 = vunpack.c.h.bf16 %v3009_v16  ;;  %v4350_v26 = vunpack.c.l.bf16 %v3012_v17  ;;  %v3056_v30 = vld [vmem:[%s2965_s4 + $0x38] sm:$0xff]   ;;  %v3091_v39 = vld [vmem:[%s2965_s4 + $0x68] sm:$0xff]   ;;  %v3100_v41 = vld [vmem:[%s2965_s4 + $0x70] sm:$0xff]  }
  0x1c   : > { %2480 = vrot.lane.b32.xlu0 %v3004_v15, %s2889_s5  ;;  %v4346_v27 = vunpack.c.h.bf16 %v3012_v17  ;;  %v3053_v29 = vpack.i.bf16 %v4356_v21, %v4360_v20  ;;  %v4342_v32 = vunpack.c.l.bf16 %v3047_v28  ;;  %v4344_v34 = vunpack.c.l.bf16 %v3056_v30  ;;  %v3137_v53 = vld [vmem:[%s2965_s4 + $0x78] sm:$0xff]  }
  0x1d   : > { %2490 = vrot.lane.b32.xlu1 %v3018_v18, %s2889_s5  ;;  %v3075_v33 = vpack.i.bf16 %v4348_v25, %v4352_v24  ;;  %v4340_v35 = vunpack.c.h.bf16 %v3056_v30  ;;  %v4338_v36 = vunpack.c.h.bf16 %v3047_v28  ;;  %v612_v42 = vunpack.c.l.bf16 %v2979_v7 }
  0x1e   : > { %v3064_v31 = vpack.i.bf16 %v4346_v27, %v4350_v26  ;;  %v613_v43 = vunpack.c.h.bf16 %v2979_v7  ;;  %v4357_v45 = vunpack.c.l.bf16 %v2985_v9  ;;  %v4353_v46 = vunpack.c.h.bf16 %v2985_v9 }
  0x1f   : > { %v3097_v40 = vpack.i.bf16 %v4338_v36, %v4342_v32  ;;  %v2514_v44 = vpack.i.bf16 %v4340_v35, %v4344_v34  ;;  %v2519_v47 = vpack.i.bf16 %v4362_v38, %v610_v37  ;;  %v4359_v48 = vunpack.c.l.bf16 %v3025_v19 }
  0x20   : > { %2485 = vrot.lane.b32.xlu0 %v3035_v22, %s2889_s5  ;;  %v4355_v49 = vunpack.c.h.bf16 %v3025_v19  ;;  %v2524_v50 = vpack.i.bf16 %v613_v43, %v612_v42  ;;  %v4349_v51 = vunpack.c.l.bf16 %v3038_v23  ;;  %v4345_v52 = vunpack.c.h.bf16 %v3038_v23 }
  0x21   : > { %2495 = vrot.lane.b32.xlu1 %v3053_v29, %s2889_s5  ;;  %v2529_v54 = vpack.i.bf16 %v4353_v46, %v4357_v45  ;;  %v4351_v55 = vunpack.c.l.bf16 %v3091_v39  ;;  %v4347_v56 = vunpack.c.h.bf16 %v3091_v39  ;;  %v4341_v58 = vunpack.c.l.bf16 %v3100_v41 }
  0x22   : > { %2405 = vmatmul.mubr.msk.bf16.gmra.mxu0 %vm352_vm0, %v2994_v12  ;;  %2421 = vmatmul.mubr.msk.bf16.gmra.mxu1 %vm352_vm0, %v3025_v19  ;;  %v2534_v57 = vpack.i.bf16 %v4355_v49, %v4359_v48  ;;  %v4337_v59 = vunpack.c.h.bf16 %v3100_v41  ;;  %v2539_v60 = vpack.i.bf16 %v4345_v52, %v4349_v51  ;;  %v4343_v61 = vunpack.c.l.bf16 %v3137_v53 }
  0x23   : > { %2408 = vmatprep.mubr.msk.bf16.mxu0 %vm352_vm0, %v3012_v17  ;;  %2424 = vmatprep.mubr.msk.bf16.mxu1 %vm352_vm0, %v3038_v23  ;;  %v4339_v62 = vunpack.c.h.bf16 %v3137_v53  ;;  %v2544_v63 = vpack.i.bf16 %v4347_v56, %v4351_v55 }
  0x24   : > { %2500 = vrot.lane.b32.xlu0 %v3064_v31, %s2889_s5  ;;  %v2549_v0 = vpack.i.bf16 %v4337_v59, %v4341_v58 }
  0x25   : > { %2505 = vrot.lane.b32.xlu1 %v3075_v33, %s2889_s5  ;;  %v2554_v1 = vpack.i.bf16 %v4339_v62, %v4343_v61  ;;  %v256_v62 = vlaneseq  ;;  %v254_v61 = vld [vmem:[%s4335_s2] sm:$0x1] }
  0x26   : > { %v255_v52 = vunpack.c.l.bf16 %v254_v61 }
  0x27   : > { %v257_v32 = vshrl.u32 %v256_v62, 7 }
  0x28   : > { %2510 = vrot.lane.b32.xlu0 %v3097_v40, %s2889_s5 }
  0x29   : > { %2515 = vrot.lane.b32.xlu1 %v2514_v44, %s2889_s5  ;;  %v258_v27 = vsub.s32 0, %v257_v32 }
  0x2a   : > { %2409 = vmatmul.mubr.msk.bf16.gmra.mxu0 %vm352_vm0, %v3009_v16  ;;  %2425 = vmatmul.mubr.msk.bf16.gmra.mxu1 %vm352_vm0, %v3091_v39 }
  0x2b   : > { %2412 = vmatprep.mubr.msk.bf16.mxu0 %vm352_vm0, %v3047_v28  ;;  %2428 = vmatprep.mubr.msk.bf16.mxu1 %vm352_vm0, %v3100_v41  ;;  %v3273_v25 = vrot.slane %v255_v52, %v258_v27 }
  0x2c   : > { %2520 = vrot.lane.b32.xlu0 %v2519_v47, %s2889_s5 }
  0x2d   : > { %2525 = vrot.lane.b32.xlu1 %v2524_v50, %s2889_s5 }
  0x30   : > { %2530 = vrot.lane.b32.xlu0 %v2529_v54, %s2889_s5 }
  0x31   : > { %2535 = vrot.lane.b32.xlu1 %v2534_v57, %s2889_s5 }
  0x32   : > { %2413 = vmatmul.mubr.msk.bf16.gmra.mxu0 %vm352_vm0, %v3056_v30  ;;  %2429 = vmatmul.mubr.msk.bf16.gmra.mxu1 %vm352_vm0, %v3137_v53 }
  0x34   : > { %2540 = vrot.lane.b32.xlu0 %v2539_v60, %s2889_s5 }
  0x35   : > { %2545 = vrot.lane.b32.xlu1 %v2544_v63, %s2889_s5 }
  0x38   : > { %2550 = vrot.lane.b32.xlu0 %v2549_v0, %s2889_s5 }
  0x39   : > { %2555 = vrot.lane.b32.xlu1 %v2554_v1, %s2889_s5 }
  0x3c   : > { %2560 = vrot.lane.b32.xlu0 %v3004_v15, %s2890_s6 }
  0x3d   : > { %2565 = vrot.lane.b32.xlu1 %v3035_v22, %s2890_s6 }
  0x40   : > { %2570 = vrot.lane.b32.xlu0 %v3018_v18, %s2890_s6 }
  0x41   : > { %2575 = vrot.lane.b32.xlu1 %v3053_v29, %s2890_s6 }
  0x44   : > { %2580 = vrot.lane.b32.xlu0 %v3064_v31, %s2890_s6 }
  0x45   : > { %2585 = vrot.lane.b32.xlu1 %v3075_v33, %s2890_s6 }
  0x48   : > { %2590 = vrot.lane.b32.xlu0 %v3097_v40, %s2890_s6 }
  0x49   : > { %2595 = vrot.lane.b32.xlu1 %v2514_v44, %s2890_s6 }
  0x4c   : > { %2600 = vrot.lane.b32.xlu0 %v2519_v47, %s2890_s6 }
  0x4d   : > { %2605 = vrot.lane.b32.xlu1 %v2524_v50, %s2890_s6 }
  0x50   : > { %2610 = vrot.lane.b32.xlu0 %v2529_v54, %s2890_s6 }
  0x51   : > { %2615 = vrot.lane.b32.xlu1 %v2534_v57, %s2890_s6 }
  0x54   : > { %2620 = vrot.lane.b32.xlu0 %v2539_v60, %s2890_s6 }
  0x55   : > { %2625 = vrot.lane.b32.xlu1 %v2544_v63, %s2890_s6 }
  0x58   : > { %2630 = vrot.lane.b32.xlu0 %v2549_v0, %s2890_s6 }
  0x59   : > { %2635 = vrot.lane.b32.xlu1 %v2554_v1, %s2890_s6 }
  0x5c   : > { %2640 = vrot.lane.b32.xlu0 %v3004_v15, %s2891_s7 }
  0x5d   : > { %2645 = vrot.lane.b32.xlu1 %v3035_v22, %s2891_s7 }
  0x60   : > { %2650 = vrot.lane.b32.xlu0 %v3018_v18, %s2891_s7 }
  0x61   : > { %2655 = vrot.lane.b32.xlu1 %v3053_v29, %s2891_s7 }
  0x64   : > { %2660 = vrot.lane.b32.xlu0 %v3064_v31, %s2891_s7 }
  0x65   : > { %2665 = vrot.lane.b32.xlu1 %v3075_v33, %s2891_s7 }
  0x68   : > { %2670 = vrot.lane.b32.xlu0 %v3097_v40, %s2891_s7 }
  0x69   : > { %2675 = vrot.lane.b32.xlu1 %v2514_v44, %s2891_s7 }
  0x6c   : > { %2680 = vrot.lane.b32.xlu0 %v2519_v47, %s2891_s7 }
  0x6d   : > { %2685 = vrot.lane.b32.xlu1 %v2524_v50, %s2891_s7 }
  0x70   : > { %2690 = vrot.lane.b32.xlu0 %v2529_v54, %s2891_s7 }
  0x71   : > { %2695 = vrot.lane.b32.xlu1 %v2534_v57, %s2891_s7 }
  0x74   : > { %2700 = vrot.lane.b32.xlu0 %v2539_v60, %s2891_s7 }
  0x75   : > { %2705 = vrot.lane.b32.xlu1 %v2544_v63, %s2891_s7 }
  0x78   : > { %2710 = vrot.lane.b32.xlu0 %v2549_v0, %s2891_s7 }
  0x79   : > { %2715 = vrot.lane.b32.xlu1 %v2554_v1, %s2891_s7 }
  0x8e   : > { %v3234_v31 = vpop.permute.xlu0 %2480 }
  0x8f   : > { %v3226_v15 = vpop.permute.xlu1 %2490 }
  0x92   : > { %v3238_v40 = vpop.permute.xlu0 %2485 }
  0x93   : > { %v3228_v18 = vpop.permute.xlu1 %2495 }
  0x96   : > { %v3242_v47 = vpop.permute.xlu0 %2500 }
  0x97   : > { %v3230_v22 = vpop.permute.xlu1 %2505 }
  0x9a   : > { %v3246_v54 = vpop.permute.xlu0 %2510 }
  0x9b   : > { %v3232_v29 = vpop.permute.xlu1 %2515  ;;  %4373 = vst [vmem:[#allocation4_spill] sm:$0xff] %v3246_v54 }
  0x9c   : > { %4372 = vst [vmem:[#allocation3_spill] sm:$0xff] %v3232_v29 }
  0x9e   : > { %v3250_v60 = vpop.permute.xlu0 %2520 }
  0x9f   : > { %v3236_v33 = vpop.permute.xlu1 %2525 }
  0xa2   : > { %v3254_v0 = vpop.permute.xlu0 %2530 }
  0xa3   : > { %v3240_v44 = vpop.permute.xlu1 %2535 }
  0xa6   : > { %v3258_v59 = vpop.permute.xlu0 %2540 }
  0xa7   : > { %v3244_v50 = vpop.permute.xlu1 %2545 }
  0xaa   : > { %v3262_v35 = vpop.permute.xlu0 %2550 }
  0xab   : > { %v3248_v57 = vpop.permute.xlu1 %2555  ;;  %4375 = vst [vmem:[#allocation6_spill] sm:$0xff] %v3262_v35 }
  0xac   : > { %4374 = vst [vmem:[#allocation5_spill] sm:$0xff] %v3248_v57  ;;  %v4388_v57 = vunpack.c.h.bf16 %v2982_v8 }
  0xae   : > { %v3269_v34 = vpop.permute.xlu0 %2560 }
  0xaf   : > { %v3252_v63 = vpop.permute.xlu1 %2565 }
  0xb2   : > { %v3275_v51 = vpop.permute.xlu0 %2570 }
  0xb3   : > { %v3256_v1 = vpop.permute.xlu1 %2575 }
  0xb6   : > { %v3285_v27 = vpop.permute.xlu0 %2580 }
  0xb7   : > { %v3260_v36 = vpop.permute.xlu1 %2585 }
  0xba   : > { %v3329_v38 = vpop.permute.xlu0 %2590 }
  0xbb   : > { %v3264_v58 = vpop.permute.xlu1 %2595  ;;  %4378 = vst [vmem:[#allocation9_spill] sm:$0xff] %v3329_v38 }
  0xbc   : > { %4376 = vst [vmem:[#allocation7_spill] sm:$0xff] %v3264_v58 }
  0xbf   : > { %v3271_v56 = vpop.permute.xlu1 %2605 }
  0xc3   : > { %v3278_v26 = vpop.permute.xlu1 %2615 }
  0xc7   : > { %v3296_v48 = vpop.permute.xlu1 %2625 }
  0xcb   : > { %v3346_v38 = vpop.permute.xlu1 %2635 }
  0xcc   : > { %4379 = vst [vmem:[#allocation10_spill] sm:$0xff] %v3346_v38 }
  0xda   : > { %v2402_v55 = vpop.f32.mrf.mxu0  ;;  %v2418_v24 = vpop.f32.mrf.mxu1 }
  0xdb   : > { %v444_v62 = vadd.f32 %v2402_v55, %v3273_v25  ;;  %v508_v46 = vadd.f32 %v2418_v24, %v3273_v25 }
  0xdc   : > { %v435_v14 = vpop.f32.mrf.mxu0  ;;  %v499_v32 = vpop.f32.mrf.mxu1 }
  0xdd   : > { %v3282_v49 = vmax.f32 %v444_v62, 0.0  ;;  %v436_v61 = vadd.f32 %v435_v14, %v3273_v25  ;;  %v3287_v52 = vmax.f32 %v508_v46, 0.0  ;;  %v500_v21 = vadd.f32 %v499_v32, %v3273_v25 }
  0xde   : > { %v2403_v45 = vpop.f32.mrf.mxu0  ;;  %v2419_v62 = vpop.f32.mrf.mxu1 }
  0xdf   : > { %4377 = vst [vmem:[#allocation8_spill] sm:$0xff] %v3287_v52  ;;  %v628_v55 = vadd.f32 %v596_v10, %v3282_v49  ;;  %v3293_v13 = vmax.f32 %v436_v61, 0.0  ;;  %v447_v24 = vadd.f32 %v2403_v45, %v3273_v25  ;;  %v644_v14 = vadd.f32 %v612_v42, %v3287_v52 }
  0xe0   : > { %v3301_v46 = vmax.f32 %v500_v21, 0.0  ;;  %v511_v32 = vadd.f32 %v2419_v62, %v3273_v25  ;;  %v438_v20 = vpop.f32.mrf.mxu0  ;;  %v502_v42 = vpop.f32.mrf.mxu1 }
  0xe1   : > { %660 = vst.msk [vmem:[%s3304_s12 + $0x10] sm:$0xff] %vm352_vm0, %v628_v55  ;;  %v626_v10 = vadd.f32 %v594_v5, %v3293_v13  ;;  %v3311_v45 = vmax.f32 %v447_v24, 0.0  ;;  %676 = vst.msk [vmem:[%s3304_s12 + $0x90] sm:$0xff] %vm352_vm0, %v644_v14  ;;  %v503_v62 = vadd.f32 %v502_v42, %v3273_v25  ;;  %v439_v55 = vadd.f32 %v438_v20, %v3273_v25 }
  0xe2   : > { %v642_v21 = vadd.f32 %v610_v37, %v3301_v46  ;;  %v3318_v61 = vmax.f32 %v511_v32, 0.0  ;;  %v2406_v6 = vpop.f32.mrf.mxu0  ;;  %v2753_v24 = vadd.low.f32.bf16 %v3282_v49, %v3238_v40  ;;  %v2422_v14 = vpop.f32.mrf.mxu1 }
  0xe3   : > { %658 = vst.msk [vmem:[%s3304_s12] sm:$0xff] %vm352_vm0, %v626_v10  ;;  %v629_v5 = vadd.f32 %v597_v11, %v3311_v45  ;;  %v3336_v32 = vmax.f32 %v503_v62, 0.0  ;;  %v460_v4 = vadd.f32 %v2406_v6, %v3273_v25  ;;  %v3341_v20 = vmax.f32 %v439_v55, 0.0 }
  0xe4   : > { %674 = vst.msk [vmem:[%s3304_s12 + $0x80] sm:$0xff] %vm352_vm0, %v642_v21  ;;  %v645_v37 = vadd.f32 %v613_v43, %v3318_v61  ;;  %v451_v11 = vpop.f32.mrf.mxu0  ;;  %886 = vrot.lane.b32.xlu0 %v2753_v24, %s2891_s7  ;;  %v524_v10 = vadd.f32 %v2422_v14, %v3273_v25  ;;  %v515_v21 = vpop.f32.mrf.mxu1  ;;  %v4380_v6 = vunpack.c.h.bf16 %v2971_v3  ;;  %v4381_v24 = vunpack.c.h.bf16 %v2968_v2 }
  0xe5   : > { %661 = vst.msk [vmem:[%s3304_s12 + $0x18] sm:$0xff] %vm352_vm0, %v629_v5  ;;  %v452_v42 = vadd.f32 %v451_v11, %v3273_v25  ;;  %v3353_v43 = vmax.f32 %v460_v4, 0.0  ;;  %v516_v62 = vadd.f32 %v515_v21, %v3273_v25  ;;  %v2754_v5 = vadd.low.f32.bf16 %v3287_v52, %v3236_v33 }
  0xe6   : > { %677 = vst.msk [vmem:[%s3304_s12 + $0x98] sm:$0xff] %vm352_vm0, %v645_v37  ;;  %v643_v7 = vadd.f32 %v4380_v6, %v3336_v32  ;;  %v2407_v55 = vpop.f32.mrf.mxu0  ;;  %v627_v14 = vadd.f32 %v4381_v24, %v3341_v20  ;;  %v3361_v11 = vmax.f32 %v524_v10, 0.0  ;;  %v2755_v3 = vadd.high.f32.bf16 %v3311_v45, %v3238_v40  ;;  %v2423_v4 = vpop.f32.mrf.mxu1 }
  0xe7   : > { %v3363_v37 = vmax.f32 %v452_v42, 0.0  ;;  %v4382_v21 = vunpack.c.l.bf16 %v2994_v12  ;;  %v3372_v35 = vmax.f32 %v516_v62, 0.0  ;;  %v463_v2 = vadd.f32 %v2407_v55, %v3273_v25 }
  0xe8   : > { %675 = vst.msk [vmem:[%s3304_s12 + $0x88] sm:$0xff] %vm352_vm0, %v643_v7  ;;  %v527_v10 = vadd.f32 %v2423_v4, %v3273_v25  ;;  %v454_v42 = vpop.f32.mrf.mxu0  ;;  %659 = vst.msk [vmem:[%s3304_s12 + $0x8] sm:$0xff] %vm352_vm0, %v627_v14  ;;  %v4383_v40 = vunpack.c.l.bf16 %v3025_v19  ;;  %v4384_v7 = vunpack.c.l.bf16 %v2982_v8  ;;  %918 = vrot.lane.b32.xlu0 %v2754_v5, %s2891_s7  ;;  %888 = vrot.lane.b32.xlu1 %v2755_v3, %s2891_s7  ;;  %v518_v55 = vpop.f32.mrf.mxu1  ;;  %v4385_v14 = vunpack.c.l.bf16 %v2985_v9 }
  0xe9   : > { %v632_v6 = vadd.f32 %v4382_v21, %v3353_v43  ;;  %v455_v62 = vadd.f32 %v454_v42, %v3273_v25  ;;  %v3387_v4 = vpop.permute.xlu0 %2600  ;;  %v519_v5 = vadd.f32 %v518_v55, %v3273_v25  ;;  %v2757_v42 = vadd.high.f32.bf16 %v3318_v61, %v3236_v33 }
  0xea   : > { %v648_v24 = vadd.f32 %v4383_v40, %v3361_v11  ;;  %v630_v54 = vadd.f32 %v4384_v7, %v3363_v37  ;;  %v646_v21 = vadd.f32 %v4385_v14, %v3372_v35  ;;  %v3394_v40 = vmax.f32 %v463_v2, 0.0  ;;  %v2410_v7 = vpop.f32.mrf.mxu0  ;;  %v3410_v14 = vpop.permute.xlu1 %2645 }
  0xeb   : > { %664 = vst.msk [vmem:[%s3304_s12 + $0x30] sm:$0xff] %vm352_vm0, %v632_v6  ;;  %v3396_v38 = vmax.f32 %v527_v10, 0.0  ;;  %v3403_v3 = vmax.f32 %v455_v62, 0.0  ;;  %v2756_v6 = vadd.low.f32.bf16 %v3282_v49, %v3252_v63  ;;  %v476_v2 = vadd.f32 %v2410_v7, %v3273_v25  ;;  %v2426_v10 = vpop.f32.mrf.mxu1 }
  0xec   : > { %680 = vst.msk [vmem:[%s3304_s12 + $0xb0] sm:$0xff] %vm352_vm0, %v648_v24  ;;  %662 = vst.msk [vmem:[%s3304_s12 + $0x20] sm:$0xff] %vm352_vm0, %v630_v54  ;;  %v4386_v54 = vunpack.c.h.bf16 %v2994_v12  ;;  %v4387_v62 = vunpack.c.h.bf16 %v3025_v19  ;;  %v3420_v58 = vmax.f32 %v519_v5, 0.0  ;;  %v540_v33 = vadd.f32 %v2426_v10, %v3273_v25  ;;  %v467_v7 = vpop.f32.mrf.mxu0  ;;  %920 = vrot.lane.b32.xlu1 %v2757_v42, %s2891_s7 }
  0xed   : > { %678 = vst.msk [vmem:[%s3304_s12 + $0xa0] sm:$0xff] %vm352_vm0, %v646_v21  ;;  %v631_v29 = vadd.f32 %v4388_v57, %v3403_v3  ;;  %1175 = vrot.lane.b32.xlu0 %v2756_v6, %s2890_s6  ;;  %v3428_v12 = vmax.f32 %v476_v2, 0.0  ;;  %v468_v21 = vadd.f32 %v467_v7, %v3273_v25  ;;  %v531_v19 = vpop.f32.mrf.mxu1  ;;  %v4389_v5 = vunpack.c.h.bf16 %v2985_v9 }
  0xee   : > { %v633_v24 = vadd.f32 %v4386_v54, %v3394_v40  ;;  %v649_v55 = vadd.f32 %v4387_v62, %v3396_v38  ;;  %v3438_v8 = vmax.f32 %v540_v33, 0.0  ;;  %v532_v57 = vadd.f32 %v531_v19, %v3273_v25  ;;  %v2411_v42 = vpop.f32.mrf.mxu0  ;;  %v3453_v33 = vpop.permute.xlu0 %2610 }
  0xef   : > { %v647_v10 = vadd.f32 %v4389_v5, %v3420_v58  ;;  %v2758_v6 = vadd.low.f32.bf16 %v3287_v52, %v3271_v56  ;;  %663 = vst.msk [vmem:[%s3304_s12 + $0x28] sm:$0xff] %vm352_vm0, %v631_v29  ;;  %v4390_v2 = vunpack.c.l.bf16 %v3009_v16  ;;  %v2759_v9 = vadd.high.f32.bf16 %v3311_v45, %v3252_v63 }
  0xf0   : > { %665 = vst.msk [vmem:[%s3304_s12 + $0x38] sm:$0xff] %vm352_vm0, %v633_v24  ;;  %681 = vst.msk [vmem:[%s3304_s12 + $0xb8] sm:$0xff] %vm352_vm0, %v649_v55  ;;  %v3448_v24 = vmax.f32 %v468_v21, 0.0  ;;  %v479_v62 = vadd.f32 %v2411_v42, %v3273_v25  ;;  %v2427_v55 = vpop.f32.mrf.mxu1  ;;  %v4391_v29 = vunpack.c.l.bf16 %v3091_v39  ;;  %v3460_v19 = vmax.f32 %v532_v57, 0.0  ;;  %v470_v5 = vpop.f32.mrf.mxu0 }
  0xf1   : > { %v636_v54 = vadd.f32 %v4390_v2, %v3428_v12  ;;  %679 = vst.msk [vmem:[%s3304_s12 + $0xa8] sm:$0xff] %vm352_vm0, %v647_v10  ;;  %v543_v21 = vadd.f32 %v2427_v55, %v3273_v25  ;;  %v4392_v63 = vunpack.c.l.bf16 %v3012_v17  ;;  %1207 = vrot.lane.b32.xlu0 %v2758_v6, %s2890_s6  ;;  %1177 = vrot.lane.b32.xlu1 %v2759_v9, %s2890_s6  ;;  %v4393_v55 = vunpack.c.l.bf16 %v3038_v23 }
  0xf2   : > { %v652_v7 = vadd.f32 %v4391_v29, %v3438_v8  ;;  %v3470_v10 = vmax.f32 %v479_v62, 0.0  ;;  %v471_v57 = vadd.f32 %v470_v5, %v3273_v25  ;;  %v534_v2 = vpop.f32.mrf.mxu1  ;;  %v2760_v6 = vadd.low.f32.bf16 %v3282_v49, %v3410_v14  ;;  %v2414_v9 = vpop.f32.mrf.mxu0 }
  0xf3   : > { %668 = vst.msk [vmem:[%s3304_s12 + $0x50] sm:$0xff] %vm352_vm0, %v636_v54  ;;  %v634_v42 = vadd.f32 %v4392_v63, %v3448_v24  ;;  %v650_v54 = vadd.f32 %v4393_v55, %v3460_v19  ;;  %v3478_v29 = vmax.f32 %v543_v21, 0.0  ;;  %v535_v63 = vadd.f32 %v534_v2, %v3273_v25 }
  0xf4   : > { %684 = vst.msk [vmem:[%s3304_s12 + $0xd0] sm:$0xff] %vm352_vm0, %v652_v7  ;;  %v4394_v62 = vunpack.c.h.bf16 %v3009_v16  ;;  %v3488_v7 = vmax.f32 %v471_v57, 0.0  ;;  %v2761_v55 = vadd.high.f32.bf16 %v3318_v61, %v3271_v56  ;;  %v492_v21 = vadd.f32 %v2414_v9, %v3273_v25  ;;  %v2430_v52 = vpop.f32.mrf.mxu1  ;;  %v483_v57 = vpop.f32.mrf.mxu0 }
  0xf5   : > { %666 = vst.msk [vmem:[%s3304_s12 + $0x40] sm:$0xff] %vm352_vm0, %v634_v42  ;;  %682 = vst.msk [vmem:[%s3304_s12 + $0xc0] sm:$0xff] %vm352_vm0, %v650_v54  ;;  %v4395_v49 = vunpack.c.h.bf16 %v3091_v39  ;;  %v3498_v42 = vmax.f32 %v535_v63, 0.0  ;;  %v556_v16 = vadd.f32 %v2430_v52, %v3273_v25  ;;  %v4396_v56 = vunpack.c.h.bf16 %v3012_v17  ;;  %1464 = vrot.lane.b32.xlu0 %v2760_v6, %s2889_s5  ;;  %v3511_v9 = vpop.permute.xlu0 %2620 }
  0xf6   : > { %v637_v5 = vadd.f32 %v4394_v62, %v3470_v10  ;;  %1209 = vrot.lane.b32.xlu1 %v2761_v55, %s2890_s6  ;;  %v3508_v54 = vmax.f32 %v492_v21, 0.0  ;;  %v484_v39 = vadd.f32 %v483_v57, %v3273_v25  ;;  %v547_v63 = vpop.f32.mrf.mxu1  ;;  %v4397_v52 = vunpack.c.h.bf16 %v3038_v23  ;;  %v2415_v21 = vpop.f32.mrf.mxu0 }
  0xf7   : > { %v653_v2 = vadd.f32 %v4395_v49, %v3478_v29  ;;  %v635_v62 = vadd.f32 %v4396_v56, %v3488_v7  ;;  %v3518_v17 = vmax.f32 %v556_v16, 0.0  ;;  %v548_v6 = vadd.f32 %v547_v63, %v3273_v25 }
  0xf8   : > { %669 = vst.msk [vmem:[%s3304_s12 + $0x58] sm:$0xff] %vm352_vm0, %v637_v5  ;;  %v651_v5 = vadd.f32 %v4397_v52, %v3498_v42  ;;  %v2762_v55 = vadd.high.f32.bf16 %v3311_v45, %v3410_v14  ;;  %v4398_v49 = vunpack.c.l.bf16 %v3056_v30  ;;  %v2763_v23 = vadd.low.f32.bf16 %v3293_v13, %v3234_v31  ;;  %v2431_v56 = vpop.f32.mrf.mxu1 }
  0xf9   : > { %685 = vst.msk [vmem:[%s3304_s12 + $0xd8] sm:$0xff] %vm352_vm0, %v653_v2  ;;  %667 = vst.msk [vmem:[%s3304_s12 + $0x48] sm:$0xff] %vm352_vm0, %v635_v62  ;;  %v3528_v2 = vmax.f32 %v484_v39, 0.0  ;;  %v495_v16 = vadd.f32 %v2415_v21, %v3273_v25  ;;  %v4399_v45 = vunpack.c.l.bf16 %v3137_v53  ;;  %v3538_v62 = vmax.f32 %v548_v6, 0.0  ;;  %v486_v39 = vpop.f32.mrf.mxu0 }
  0xfa   : > { %v640_v57 = vadd.f32 %v4398_v49, %v3508_v54  ;;  %683 = vst.msk [vmem:[%s3304_s12 + $0xc8] sm:$0xff] %vm352_vm0, %v651_v5  ;;  %v559_v63 = vadd.f32 %v2431_v56, %v3273_v25  ;;  %v4400_v52 = vunpack.c.l.bf16 %v3047_v28  ;;  %1466 = vrot.lane.b32.xlu1 %v2762_v55, %s2889_s5  ;;  %882 = vrot.lane.b32.xlu0 %v2763_v23, %s2891_s7  ;;  %v550_v21 = vpop.f32.mrf.mxu1  ;;  %v4402_v55 = vunpack.c.h.bf16 %v3056_v30 }
  0xfb   : > { %v656_v14 = vadd.f32 %v4399_v45, %v3518_v17  ;;  %v3548_v5 = vmax.f32 %v495_v16, 0.0  ;;  %v487_v6 = vadd.f32 %v486_v39, %v3273_v25  ;;  %v2765_v39 = vadd.low.f32.bf16 %v3301_v46, %v3250_v60 }
  0xfc   : > { %672 = vst.msk [vmem:[%s3304_s12 + $0x70] sm:$0xff] %vm352_vm0, %v640_v57  ;;  %v638_v49 = vadd.f32 %v4400_v52, %v3528_v2  ;;  %v4401_v57 = vunpack.c.l.bf16 %v3100_v41  ;;  %v3556_v45 = vmax.f32 %v559_v63, 0.0  ;;  %v551_v52 = vadd.f32 %v550_v21, %v3273_v25  ;;  %v3570_v63 = vpop.permute.xlu0 %2630 }
  0xfd   : > { %688 = vst.msk [vmem:[%s3304_s12 + $0xf0] sm:$0xff] %vm352_vm0, %v656_v14  ;;  %v641_v23 = vadd.f32 %v4402_v55, %v3548_v5  ;;  %v3564_v16 = vmax.f32 %v487_v6, 0.0  ;;  %v2764_v14 = vadd.high.f32.bf16 %v3341_v20, %v3234_v31  ;;  %v4403_v25 = vunpack.c.h.bf16 %v3137_v53 }
  0xfe   : > { %v654_v56 = vadd.f32 %v4401_v57, %v3538_v62  ;;  %670 = vst.msk [vmem:[%s3304_s12 + $0x60] sm:$0xff] %vm352_vm0, %v638_v49  ;;  %v3577_v21 = vmax.f32 %v551_v52, 0.0  ;;  %v4404_v30 = vunpack.c.h.bf16 %v3047_v28  ;;  %914 = vrot.lane.b32.xlu0 %v2765_v39, %s2891_s7  ;;  %v4405_v31 = vunpack.c.h.bf16 %v3100_v41  ;;  %v2656_v39 = vpop.permute.xlu1 %2655 }
  0xff   : > { %v657_v49 = vadd.f32 %v4403_v25, %v3556_v45  ;;  %673 = vst.msk [vmem:[%s3304_s12 + $0x78] sm:$0xff] %vm352_vm0, %v641_v23  ;;  %884 = vrot.lane.b32.xlu1 %v2764_v14, %s2891_s7  ;;  %v2766_v53 = vadd.high.f32.bf16 %v3336_v32, %v3250_v60  ;;  %v2768_v52 = vadd.high.f32.bf16 %v3341_v20, %v3269_v34 }
 0x100   : > { %686 = vst.msk [vmem:[%s3304_s12 + $0xe0] sm:$0xff] %vm352_vm0, %v654_v56  ;;  %v639_v6 = vadd.f32 %v4404_v30, %v3564_v16  ;;  %v655_v57 = vadd.f32 %v4405_v31, %v3577_v21  ;;  %v2767_v56 = vadd.low.f32.bf16 %v3293_v13, %v3269_v34  ;;  %v2641_v28 = vpop.permute.xlu0 %2640  ;;  %v2769_v41 = vadd.low.f32.bf16 %v3301_v46, %v3387_v4 }
 0x101   : > { %689 = vst.msk [vmem:[%s3304_s12 + $0xf8] sm:$0xff] %vm352_vm0, %v657_v49  ;;  %v2770_v60 = vadd.high.f32.bf16 %v3336_v32, %v3387_v4  ;;  %v2771_v55 = vadd.low.f32.bf16 %v3293_v13, %v2641_v28  ;;  %v2772_v23 = vadd.high.f32.bf16 %v3341_v20, %v2641_v28  ;;  %v2773_v34 = vadd.low.f32.bf16 %v3353_v43, %v3228_v18 }
 0x102   : > { %671 = vst.msk [vmem:[%s3304_s12 + $0x68] sm:$0xff] %vm352_vm0, %v639_v6  ;;  %687 = vst.msk [vmem:[%s3304_s12 + $0xe8] sm:$0xff] %vm352_vm0, %v655_v57  ;;  %1171 = vrot.lane.b32.xlu0 %v2767_v56, %s2890_s6  ;;  %v2774_v14 = vadd.high.f32.bf16 %v3394_v40, %v3228_v18  ;;  %v2775_v4 = vadd.low.f32.bf16 %v3361_v11, %v3240_v44  ;;  %v2776_v13 = vadd.high.f32.bf16 %v3396_v38, %v3240_v44 }
 0x103   : > { %916 = vrot.lane.b32.xlu1 %v2766_v53, %s2891_s7  ;;  %v2777_v20 = vadd.low.f32.bf16 %v3353_v43, %v3256_v1  ;;  %v2778_v18 = vadd.high.f32.bf16 %v3394_v40, %v3256_v1  ;;  %v2779_v25 = vadd.low.f32.bf16 %v3361_v11, %v3278_v26  ;;  %v2780_v44 = vadd.high.f32.bf16 %v3396_v38, %v3278_v26 }
 0x104   : > { %v2781_v49 = vadd.low.f32.bf16 %v3353_v43, %v2656_v39  ;;  %v2782_v30 = vadd.high.f32.bf16 %v3394_v40, %v2656_v39  ;;  %v2783_v1 = vadd.low.f32.bf16 %v3363_v37, %v3226_v15  ;;  %v2784_v6 = vadd.high.f32.bf16 %v3403_v3, %v3226_v15  ;;  %v2651_v31 = vpop.permute.xlu0 %2650 }
 0x105   : > { %v2785_v26 = vadd.low.f32.bf16 %v3372_v35, %v3254_v0  ;;  %v2786_v43 = vadd.high.f32.bf16 %v3420_v58, %v3254_v0  ;;  %v2787_v40 = vadd.low.f32.bf16 %v3363_v37, %v3275_v51  ;;  %v2788_v15 = vadd.high.f32.bf16 %v3403_v3, %v3275_v51 }
 0x106   : > { %1203 = vrot.lane.b32.xlu0 %v2769_v41, %s2890_s6  ;;  %v2789_v57 = vadd.low.f32.bf16 %v3372_v35, %v3453_v33  ;;  %v2790_v0 = vadd.high.f32.bf16 %v3420_v58, %v3453_v33  ;;  %v2791_v53 = vadd.low.f32.bf16 %v3363_v37, %v2651_v31  ;;  %v2792_v56 = vadd.high.f32.bf16 %v3403_v3, %v2651_v31  ;;  %v3685_v41 = vpop.permute.xlu1 %2665 }
 0x107   : > { %1173 = vrot.lane.b32.xlu1 %v2768_v52, %s2890_s6  ;;  %v2793_v51 = vadd.low.f32.bf16 %v3428_v12, %v3230_v22  ;;  %v2794_v28 = vadd.high.f32.bf16 %v3470_v10, %v3230_v22  ;;  %v2795_v33 = vadd.low.f32.bf16 %v3438_v8, %v3244_v50  ;;  %v2796_v3 = vadd.high.f32.bf16 %v3478_v29, %v3244_v50 }
 0x108   : > { %v3677_v37 = vpop.permute.xlu0 %2660  ;;  %v2797_v52 = vadd.low.f32.bf16 %v3428_v12, %v3260_v36  ;;  %v2805_v39 = vadd.low.f32.bf16 %v3448_v24, %v3285_v27 }
 0x10a   : > { %1460 = vrot.lane.b32.xlu0 %v2771_v55, %s2889_s5  ;;  %v2799_v55 = vadd.low.f32.bf16 %v3438_v8, %v3296_v48  ;;  %v3697_v50 = vpop.permute.xlu1 %2675 }
 0x10b   : > { %1205 = vrot.lane.b32.xlu1 %v2770_v60, %s2890_s6  ;;  %v2798_v60 = vadd.high.f32.bf16 %v3470_v10, %v3260_v36  ;;  %v2802_v36 = vadd.high.f32.bf16 %v3488_v7, %v3242_v47 }
 0x10c   : > { %v3689_v22 = vpop.permute.xlu0 %2670 }
 0x10e   : > { %894 = vrot.lane.b32.xlu0 %v2773_v34, %s2891_s7  ;;  %v2801_v34 = vadd.low.f32.bf16 %v3448_v24, %v3242_v47 }
 0x10f   : > { %1462 = vrot.lane.b32.xlu1 %v2772_v23, %s2889_s5  ;;  %v2800_v23 = vadd.high.f32.bf16 %v3478_v29, %v3296_v48  ;;  %v2804_v48 = vadd.high.f32.bf16 %v3498_v42, %v3258_v59 }
 0x112   : > { %926 = vrot.lane.b32.xlu0 %v2775_v4, %s2891_s7  ;;  %v2803_v4 = vadd.low.f32.bf16 %v3460_v19, %v3258_v59 }
 0x113   : > { %896 = vrot.lane.b32.xlu1 %v2774_v14, %s2891_s7  ;;  %v3703_v14 = vpop.permute.xlu0 %2680 }
 0x116   : > { %1183 = vrot.lane.b32.xlu0 %v2777_v20, %s2890_s6 }
 0x117   : > { %928 = vrot.lane.b32.xlu1 %v2776_v13, %s2891_s7  ;;  %v3711_v13 = vpop.permute.xlu1 %2685  ;;  %v3713_v20 = vpop.permute.xlu0 %2690 }
 0x11a   : > { %1215 = vrot.lane.b32.xlu0 %v2779_v25, %s2890_s6  ;;  %v2806_v25 = vadd.high.f32.bf16 %v3488_v7, %v3285_v27 }
 0x11b   : > { %1185 = vrot.lane.b32.xlu1 %v2778_v18, %s2890_s6  ;;  %v3721_v18 = vpop.permute.xlu1 %2695  ;;  %v3723_v47 = vpop.permute.xlu0 %2700 }
 0x11e   : > { %1472 = vrot.lane.b32.xlu0 %v2781_v49, %s2889_s5 }
 0x11f   : > { %1217 = vrot.lane.b32.xlu1 %v2780_v44, %s2890_s6  ;;  %v2807_v44 = vadd.low.f32.bf16 %v3460_v19, %v3511_v9  ;;  %v3731_v49 = vpop.permute.xlu1 %2705  ;;  %v3735_v59 = vpop.permute.xlu0 %2710 }
 0x122   : > { %890 = vrot.lane.b32.xlu0 %v2783_v1, %s2891_s7  ;;  %v4406_v1 = vld [vmem:[#allocation3_spill] sm:$0xff] }
 0x123   : > { %1474 = vrot.lane.b32.xlu1 %v2782_v30, %s2889_s5  ;;  %v2808_v30 = vadd.high.f32.bf16 %v3498_v42, %v3511_v9  ;;  %v3743_v27 = vpop.permute.xlu1 %2715 }
 0x126   : > { %922 = vrot.lane.b32.xlu0 %v2785_v26, %s2891_s7 }
 0x127   : > { %892 = vrot.lane.b32.xlu1 %v2784_v6, %s2891_s7  ;;  %v2809_v6 = vadd.low.f32.bf16 %v3508_v54, %v4406_v1 }
 0x12a   : > { %1179 = vrot.lane.b32.xlu0 %v2787_v40, %s2890_s6  ;;  %v4407_v40 = vld [vmem:[#allocation5_spill] sm:$0xff] }
 0x12b   : > { %924 = vrot.lane.b32.xlu1 %v2786_v43, %s2891_s7  ;;  %v2810_v43 = vadd.high.f32.bf16 %v3488_v7, %v3677_v37  ;;  %v2811_v31 = vadd.low.f32.bf16 %v3518_v17, %v4407_v40 }
 0x12e   : > { %1211 = vrot.lane.b32.xlu0 %v2789_v57, %s2890_s6  ;;  %v2812_v57 = vadd.high.f32.bf16 %v3548_v5, %v4406_v1  ;;  %v4412_v1 = vld [vmem:[#allocation9_spill] sm:$0xff] }
 0x12f   : > { %1181 = vrot.lane.b32.xlu1 %v2788_v15, %s2890_s6 }
 0x132   : > { %1468 = vrot.lane.b32.xlu0 %v2791_v53, %s2889_s5 }
 0x133   : > { %1213 = vrot.lane.b32.xlu1 %v2790_v0, %s2890_s6  ;;  %v4408_v0 = vld [vmem:[#allocation7_spill] sm:$0xff] }
 0x134   : > { %v2813_v53 = vadd.low.f32.bf16 %v3508_v54, %v4408_v0 }
 0x136   : > { %902 = vrot.lane.b32.xlu0 %v2793_v51, %s2891_s7  ;;  %v2814_v51 = vadd.high.f32.bf16 %v3556_v45, %v4407_v40 }
 0x137   : > { %1470 = vrot.lane.b32.xlu1 %v2792_v56, %s2889_s5 }
 0x13a   : > { %934 = vrot.lane.b32.xlu0 %v2795_v33, %s2891_s7 }
 0x13b   : > { %904 = vrot.lane.b32.xlu1 %v2794_v28, %s2891_s7  ;;  %v4409_v28 = vld [vmem:[#allocation10_spill] sm:$0xff] }
 0x13c   : > { %v2815_v33 = vadd.low.f32.bf16 %v3518_v17, %v4409_v28 }
 0x13e   : > { %1191 = vrot.lane.b32.xlu0 %v2797_v52, %s2890_s6 }
 0x13f   : > { %936 = vrot.lane.b32.xlu1 %v2796_v3, %s2891_s7 }
 0x142   : > { %1223 = vrot.lane.b32.xlu0 %v2799_v55, %s2890_s6  ;;  %v4410_v55 = vld [vmem:[#allocation4_spill] sm:$0xff] }
 0x143   : > { %1193 = vrot.lane.b32.xlu1 %v2798_v60, %s2890_s6  ;;  %v2816_v60 = vadd.high.f32.bf16 %v3548_v5, %v4408_v0  ;;  %v2825_v0 = vadd.low.f32.bf16 %v3448_v24, %v3677_v37 }
 0x146   : > { %898 = vrot.lane.b32.xlu0 %v2801_v34, %s2891_s7 }
 0x147   : > { %1225 = vrot.lane.b32.xlu1 %v2800_v23, %s2890_s6  ;;  %v2817_v23 = vadd.low.f32.bf16 %v3528_v2, %v4410_v55 }
 0x14a   : > { %930 = vrot.lane.b32.xlu0 %v2803_v4, %s2891_s7  ;;  %v2818_v4 = vadd.high.f32.bf16 %v3556_v45, %v4409_v28  ;;  %v2828_v28 = vadd.high.f32.bf16 %v3470_v10, %v3685_v41  ;;  %v2831_v10 = vadd.low.f32.bf16 %v3508_v54, %v3697_v50  ;;  %v4413_v54 = vld [vmem:[#allocation8_spill] sm:$0xff] }
 0x14b   : > { %900 = vrot.lane.b32.xlu1 %v2802_v36, %s2891_s7 }
 0x14e   : > { %1187 = vrot.lane.b32.xlu0 %v2805_v39, %s2890_s6 }
 0x14f   : > { %932 = vrot.lane.b32.xlu1 %v2804_v48, %s2891_s7  ;;  %v4411_v48 = vld [vmem:[#allocation6_spill] sm:$0xff] }
 0x150   : > { %v2819_v39 = vadd.low.f32.bf16 %v3538_v62, %v4411_v48  ;;  %v2822_v40 = vadd.high.f32.bf16 %v3577_v21, %v4411_v48 }
 0x152   : > { %1219 = vrot.lane.b32.xlu0 %v2807_v44, %s2890_s6 }
 0x153   : > { %1189 = vrot.lane.b32.xlu1 %v2806_v25, %s2890_s6 }
 0x156   : > { %910 = vrot.lane.b32.xlu0 %v2809_v6, %s2891_s7  ;;  %v887_v26 = vpop.permute.xlu0 %886  ;;  %v2821_v6 = vadd.low.f32.bf16 %v3528_v2, %v4412_v1 }
 0x157   : > { %1221 = vrot.lane.b32.xlu1 %v2808_v30, %s2890_s6  ;;  %2278 = vst.msk [vmem:[%s3304_s12 + $0x110] sm:$0xff] %vm352_vm0, %v887_v26  ;;  %v2820_v30 = vadd.high.f32.bf16 %v3564_v16, %v4410_v55 }
 0x15a   : > { %942 = vrot.lane.b32.xlu0 %v2811_v31, %s2891_s7  ;;  %v919_v9 = vpop.permute.xlu0 %918  ;;  %v889_v15 = vpop.permute.xlu1 %888  ;;  %v2823_v31 = vadd.low.f32.bf16 %v3538_v62, %v3570_v63 }
 0x15b   : > { %1478 = vrot.lane.b32.xlu1 %v2810_v43, %s2889_s5  ;;  %2294 = vst.msk [vmem:[%s3304_s12 + $0x190] sm:$0xff] %vm352_vm0, %v919_v9  ;;  %2279 = vst.msk [vmem:[%s3304_s12 + $0x118] sm:$0xff] %vm352_vm0, %v889_v15 }
 0x15e   : > { %1199 = vrot.lane.b32.xlu0 %v2813_v53, %s2890_s6  ;;  %v921_v56 = vpop.permute.xlu1 %920 }
 0x15f   : > { %912 = vrot.lane.b32.xlu1 %v2812_v57, %s2891_s7  ;;  %v1176_v7 = vpop.permute.xlu0 %1175  ;;  %2295 = vst.msk [vmem:[%s3304_s12 + $0x198] sm:$0xff] %vm352_vm0, %v921_v56  ;;  %v2824_v57 = vadd.high.f32.bf16 %v3564_v16, %v4412_v1  ;;  %v2826_v56 = vadd.high.f32.bf16 %v3577_v21, %v3570_v63  ;;  %v2829_v63 = vadd.low.f32.bf16 %v3528_v2, %v3689_v22 }
 0x160   : > { %2310 = vst.msk [vmem:[%s3304_s12 + $0x210] sm:$0xff] %vm352_vm0, %v1176_v7  ;;  %v2832_v2 = vadd.low.f32.bf16 %v3301_v46, %v3703_v14  ;;  %v2835_v46 = vadd.high.f32.bf16 %v3336_v32, %v3703_v14  ;;  %v2838_v14 = vadd.low.f32.bf16 %v3361_v11, %v3721_v18  ;;  %v2841_v11 = vadd.low.f32.bf16 %v3460_v19, %v3723_v47 }
 0x162   : > { %1231 = vrot.lane.b32.xlu0 %v2815_v33, %s2890_s6 }
 0x163   : > { %944 = vrot.lane.b32.xlu1 %v2814_v51, %s2891_s7  ;;  %v1208_v3 = vpop.permute.xlu0 %1207  ;;  %v1178_v52 = vpop.permute.xlu1 %1177  ;;  %v2827_v51 = vadd.low.f32.bf16 %v3428_v12, %v3685_v41 }
 0x164   : > { %2326 = vst.msk [vmem:[%s3304_s12 + $0x290] sm:$0xff] %vm352_vm0, %v1208_v3  ;;  %2311 = vst.msk [vmem:[%s3304_s12 + $0x218] sm:$0xff] %vm352_vm0, %v1178_v52  ;;  %v2830_v3 = vadd.high.f32.bf16 %v3564_v16, %v3689_v22  ;;  %v2833_v16 = vadd.high.f32.bf16 %v3548_v5, %v3697_v50  ;;  %v2834_v22 = vadd.low.f32.bf16 %v4413_v54, %v3711_v13 }
 0x165   : > { %v2836_v5 = vadd.high.f32.bf16 %v3318_v61, %v3711_v13  ;;  %v2837_v50 = vadd.low.f32.bf16 %v3372_v35, %v3713_v20  ;;  %v2839_v61 = vadd.high.f32.bf16 %v3420_v58, %v3713_v20  ;;  %v2842_v20 = vadd.low.f32.bf16 %v3438_v8, %v3731_v49 }
 0x166   : > { %906 = vrot.lane.b32.xlu0 %v2817_v23, %s2891_s7  ;;  %v2845_v8 = vadd.low.f32.bf16 %v3538_v62, %v3735_v59 }
 0x167   : > { %1201 = vrot.lane.b32.xlu1 %v2816_v60, %s2890_s6  ;;  %v1465_v34 = vpop.permute.xlu0 %1464 }
 0x168   : > { %v1210_v36 = vpop.permute.xlu1 %1209  ;;  %2342 = vst.msk [vmem:[%s3304_s12 + $0x310] sm:$0xff] %vm352_vm0, %v1465_v34  ;;  %v2840_v34 = vadd.high.f32.bf16 %v3396_v38, %v3721_v18  ;;  %v2843_v38 = vadd.high.f32.bf16 %v3498_v42, %v3723_v47  ;;  %v2846_v47 = vadd.high.f32.bf16 %v3577_v21, %v3735_v59  ;;  %v2848_v21 = vadd.high.f32.bf16 %v3556_v45, %v3743_v27 }
 0x169   : > { %2327 = vst.msk [vmem:[%s3304_s12 + $0x298] sm:$0xff] %vm352_vm0, %v1210_v36 }
 0x16a   : > { %938 = vrot.lane.b32.xlu0 %v2819_v39, %s2891_s7 }
 0x16b   : > { %1233 = vrot.lane.b32.xlu1 %v2818_v4, %s2890_s6  ;;  %v2844_v4 = vadd.high.f32.bf16 %v3478_v29, %v3731_v49  ;;  %v2847_v29 = vadd.low.f32.bf16 %v3518_v17, %v3743_v27 }
 0x16c   : > { %v1467_v25 = vpop.permute.xlu1 %1466  ;;  %v883_v44 = vpop.permute.xlu0 %882 }
 0x16d   : > { %2343 = vst.msk [vmem:[%s3304_s12 + $0x318] sm:$0xff] %vm352_vm0, %v1467_v25  ;;  %2276 = vst.msk [vmem:[%s3304_s12 + $0x100] sm:$0xff] %vm352_vm0, %v883_v44 }
 0x16e   : > { %1195 = vrot.lane.b32.xlu0 %v2821_v6, %s2890_s6 }
 0x16f   : > { %908 = vrot.lane.b32.xlu1 %v2820_v30, %s2891_s7 }
 0x170   : > { %v915_v43 = vpop.permute.xlu0 %914 }
 0x171   : > { %v885_v26 = vpop.permute.xlu1 %884  ;;  %2292 = vst.msk [vmem:[%s3304_s12 + $0x180] sm:$0xff] %vm352_vm0, %v915_v43 }
 0x172   : > { %2277 = vst.msk [vmem:[%s3304_s12 + $0x108] sm:$0xff] %vm352_vm0, %v885_v26  ;;  %1227 = vrot.lane.b32.xlu0 %v2823_v31, %s2890_s6 }
 0x173   : > { %940 = vrot.lane.b32.xlu1 %v2822_v40, %s2891_s7 }
 0x174   : > { %v1172_v15 = vpop.permute.xlu0 %1171 }
 0x175   : > { %v917_v9 = vpop.permute.xlu1 %916  ;;  %2308 = vst.msk [vmem:[%s3304_s12 + $0x200] sm:$0xff] %vm352_vm0, %v1172_v15 }
 0x176   : > { %2293 = vst.msk [vmem:[%s3304_s12 + $0x188] sm:$0xff] %vm352_vm0, %v917_v9  ;;  %1476 = vrot.lane.b32.xlu0 %v2825_v0, %s2889_s5 }
 0x177   : > { %1197 = vrot.lane.b32.xlu1 %v2824_v57, %s2890_s6 }
 0x178   : > { %v1204_v7 = vpop.permute.xlu0 %1203 }
 0x179   : > { %v1174_v53 = vpop.permute.xlu1 %1173  ;;  %2324 = vst.msk [vmem:[%s3304_s12 + $0x280] sm:$0xff] %vm352_vm0, %v1204_v7 }
 0x17a   : > { %2309 = vst.msk [vmem:[%s3304_s12 + $0x208] sm:$0xff] %vm352_vm0, %v1174_v53  ;;  %1480 = vrot.lane.b32.xlu0 %v2827_v51, %s2889_s5 }
 0x17b   : > { %1229 = vrot.lane.b32.xlu1 %v2826_v56, %s2890_s6 }
 0x17c   : > { %v1461_v37 = vpop.permute.xlu0 %1460 }
 0x17d   : > { %v1206_v24 = vpop.permute.xlu1 %1205  ;;  %2340 = vst.msk [vmem:[%s3304_s12 + $0x300] sm:$0xff] %vm352_vm0, %v1461_v37 }
 0x17e   : > { %2325 = vst.msk [vmem:[%s3304_s12 + $0x288] sm:$0xff] %vm352_vm0, %v1206_v24  ;;  %1484 = vrot.lane.b32.xlu0 %v2829_v63, %s2889_s5 }
 0x17f   : > { %1482 = vrot.lane.b32.xlu1 %v2828_v28, %s2889_s5 }
 0x180   : > { %v895_v33 = vpop.permute.xlu0 %894 }
 0x181   : > { %v1463_v12 = vpop.permute.xlu1 %1462  ;;  %2282 = vst.msk [vmem:[%s3304_s12 + $0x130] sm:$0xff] %vm352_vm0, %v895_v33 }
 0x182   : > { %2341 = vst.msk [vmem:[%s3304_s12 + $0x308] sm:$0xff] %vm352_vm0, %v1463_v12  ;;  %1488 = vrot.lane.b32.xlu0 %v2831_v10, %s2889_s5 }
 0x183   : > { %1486 = vrot.lane.b32.xlu1 %v2830_v3, %s2889_s5 }
 0x184   : > { %v927_v52 = vpop.permute.xlu0 %926 }
 0x185   : > { %v897_v41 = vpop.permute.xlu1 %896  ;;  %2298 = vst.msk [vmem:[%s3304_s12 + $0x1b0] sm:$0xff] %vm352_vm0, %v927_v52 }
 0x186   : > { %2283 = vst.msk [vmem:[%s3304_s12 + $0x138] sm:$0xff] %vm352_vm0, %v897_v41  ;;  %1492 = vrot.lane.b32.xlu0 %v2832_v2, %s2889_s5 }
 0x187   : > { %1490 = vrot.lane.b32.xlu1 %v2833_v16, %s2889_s5 }
 0x188   : > { %v1184_v55 = vpop.permute.xlu0 %1183 }
 0x189   : > { %v929_v60 = vpop.permute.xlu1 %928  ;;  %2314 = vst.msk [vmem:[%s3304_s12 + $0x230] sm:$0xff] %vm352_vm0, %v1184_v55 }
 0x18a   : > { %2299 = vst.msk [vmem:[%s3304_s12 + $0x1b8] sm:$0xff] %vm352_vm0, %v929_v60  ;;  %1496 = vrot.lane.b32.xlu0 %v2834_v22, %s2889_s5 }
 0x18b   : > { %1494 = vrot.lane.b32.xlu1 %v2835_v46, %s2889_s5 }
 0x18c   : > { %v1216_v32 = vpop.permute.xlu0 %1215 }
 0x18d   : > { %v1186_v23 = vpop.permute.xlu1 %1185  ;;  %2330 = vst.msk [vmem:[%s3304_s12 + $0x2b0] sm:$0xff] %vm352_vm0, %v1216_v32 }
 0x18e   : > { %2315 = vst.msk [vmem:[%s3304_s12 + $0x238] sm:$0xff] %vm352_vm0, %v1186_v23  ;;  %1500 = vrot.lane.b32.xlu0 %v2837_v50, %s2889_s5 }
 0x18f   : > { %1498 = vrot.lane.b32.xlu1 %v2836_v5, %s2889_s5 }
 0x190   : > { %v1473_v35 = vpop.permute.xlu0 %1472 }
 0x191   : > { %v1218_v13 = vpop.permute.xlu1 %1217  ;;  %2346 = vst.msk [vmem:[%s3304_s12 + $0x330] sm:$0xff] %vm352_vm0, %v1473_v35 }
 0x192   : > { %2331 = vst.msk [vmem:[%s3304_s12 + $0x2b8] sm:$0xff] %vm352_vm0, %v1218_v13  ;;  %1504 = vrot.lane.b32.xlu0 %v2838_v14, %s2889_s5 }
 0x193   : > { %1502 = vrot.lane.b32.xlu1 %v2839_v61, %s2889_s5 }
 0x194   : > { %v891_v58 = vpop.permute.xlu0 %890 }
 0x195   : > { %v1475_v36 = vpop.permute.xlu1 %1474  ;;  %2280 = vst.msk [vmem:[%s3304_s12 + $0x120] sm:$0xff] %vm352_vm0, %v891_v58 }
 0x196   : > { %2347 = vst.msk [vmem:[%s3304_s12 + $0x338] sm:$0xff] %vm352_vm0, %v1475_v36  ;;  %1508 = vrot.lane.b32.xlu0 %v2841_v11, %s2889_s5 }
 0x197   : > { %1506 = vrot.lane.b32.xlu1 %v2840_v34, %s2889_s5 }
 0x198   : > { %v923_v19 = vpop.permute.xlu0 %922 }
 0x199   : > { %v893_v18 = vpop.permute.xlu1 %892  ;;  %2296 = vst.msk [vmem:[%s3304_s12 + $0x1a0] sm:$0xff] %vm352_vm0, %v923_v19 }
 0x19a   : > { %2281 = vst.msk [vmem:[%s3304_s12 + $0x128] sm:$0xff] %vm352_vm0, %v893_v18  ;;  %1512 = vrot.lane.b32.xlu0 %v2842_v20, %s2889_s5 }
 0x19b   : > { %1510 = vrot.lane.b32.xlu1 %v2843_v38, %s2889_s5 }
 0x19c   : > { %v1180_v42 = vpop.permute.xlu0 %1179 }
 0x19d   : > { %v925_v48 = vpop.permute.xlu1 %924  ;;  %2312 = vst.msk [vmem:[%s3304_s12 + $0x220] sm:$0xff] %vm352_vm0, %v1180_v42 }
 0x19e   : > { %2297 = vst.msk [vmem:[%s3304_s12 + $0x1a8] sm:$0xff] %vm352_vm0, %v925_v48  ;;  %1516 = vrot.lane.b32.xlu0 %v2845_v8, %s2889_s5 }
 0x19f   : > { %1514 = vrot.lane.b32.xlu1 %v2844_v4, %s2889_s5 }
 0x1a0   : > { %v1212_v49 = vpop.permute.xlu0 %1211 }
 0x1a1   : > { %v1182_v62 = vpop.permute.xlu1 %1181  ;;  %2328 = vst.msk [vmem:[%s3304_s12 + $0x2a0] sm:$0xff] %vm352_vm0, %v1212_v49  ;;  %v1890_v49 = vld [vmem:[%s3304_s12 + $0x18] sm:$0xff] (%p2944_p3) }
 0x1a2   : > { %2313 = vst.msk [vmem:[%s3304_s12 + $0x228] sm:$0xff] %vm352_vm0, %v1182_v62  ;;  %1520 = vrot.lane.b32.xlu0 %v2847_v29, %s2889_s5  ;;  %v1886_v29 = vld [vmem:[%s3304_s12 + $0x8] sm:$0xff] (%p2944_p3)  ;;  %v1888_v62 = vld [vmem:[%s3304_s12 + $0x10] sm:$0xff] (%p2944_p3) }
 0x1a3   : > { %1518 = vrot.lane.b32.xlu1 %v2846_v47, %s2889_s5  ;;  %v1884_v47 = vld [vmem:[%s3304_s12] sm:$0xff] (%p2944_p3)  ;;  %1887 = vst [vmem:[%s4063_s23 + $0x8] sm:$0xff] (%p2944_p3), %v1886_v29  ;;  %1889 = vst [vmem:[%s4063_s23 + $0x10] sm:$0xff] (%p2944_p3), %v1888_v62 }
 0x1a4   : > { %v1469_v17 = vpop.permute.xlu0 %1468  ;;  %1885 = vst [vmem:[%s4063_s23] sm:$0xff] (%p2944_p3), %v1884_v47  ;;  %1891 = vst [vmem:[%s4063_s23 + $0x18] sm:$0xff] (%p2944_p3), %v1890_v49  ;;  %v2012_v47 = vld [vmem:[%s3304_s12 + $0x200] sm:$0xff] (%p2944_p3)  ;;  %v2014_v29 = vld [vmem:[%s3304_s12 + $0x208] sm:$0xff] (%p2944_p3) }
 0x1a5   : > { %v1214_v59 = vpop.permute.xlu1 %1213  ;;  %2344 = vst.msk [vmem:[%s3304_s12 + $0x320] sm:$0xff] %vm352_vm0, %v1469_v17  ;;  %v1896_v17 = vld [vmem:[%s3304_s12 + $0x30] sm:$0xff] (%p2944_p3)  ;;  %2013 = vst [vmem:[%s4063_s23 + $0x400] sm:$0xff] (%p2944_p3), %v2012_v47  ;;  %v2018_v49 = vld [vmem:[%s3304_s12 + $0x218] sm:$0xff] (%p2944_p3) }
 0x1a6   : > { %2329 = vst.msk [vmem:[%s3304_s12 + $0x2a8] sm:$0xff] %vm352_vm0, %v1214_v59  ;;  %v1894_v59 = vld [vmem:[%s3304_s12 + $0x28] sm:$0xff] (%p2944_p3)  ;;  %1897 = vst [vmem:[%s4063_s23 + $0x30] sm:$0xff] (%p2944_p3), %v1896_v17  ;;  %v2016_v62 = vld [vmem:[%s3304_s12 + $0x210] sm:$0xff] (%p2944_p3) }
 0x1a7   : > { %1522 = vrot.lane.b32.xlu1 %v2848_v21, %s2889_s5  ;;  %v1892_v21 = vld [vmem:[%s3304_s12 + $0x20] sm:$0xff] (%p2944_p3)  ;;  %1895 = vst [vmem:[%s4063_s23 + $0x28] sm:$0xff] (%p2944_p3), %v1894_v59  ;;  %2015 = vst [vmem:[%s4063_s23 + $0x408] sm:$0xff] (%p2944_p3), %v2014_v29 }
 0x1a8   : > { %v903_v25 = vpop.permute.xlu0 %902  ;;  %1893 = vst [vmem:[%s4063_s23 + $0x20] sm:$0xff] (%p2944_p3), %v1892_v21  ;;  %v2020_v21 = vld [vmem:[%s3304_s12 + $0x220] sm:$0xff] (%p2944_p3)  ;;  %2017 = vst [vmem:[%s4063_s23 + $0x410] sm:$0xff] (%p2944_p3), %v2016_v62  ;;  %v2024_v17 = vld [vmem:[%s3304_s12 + $0x230] sm:$0xff] (%p2944_p3) }
 0x1a9   : > { %v1471_v39 = vpop.permute.xlu1 %1470  ;;  %2286 = vst.msk [vmem:[%s3304_s12 + $0x150] sm:$0xff] %vm352_vm0, %v903_v25  ;;  %v1900_v25 = vld [vmem:[%s3304_s12 + $0x40] sm:$0xff] (%p2944_p3)  ;;  %2019 = vst [vmem:[%s4063_s23 + $0x418] sm:$0xff] (%p2944_p3), %v2018_v49  ;;  %v2022_v59 = vld [vmem:[%s3304_s12 + $0x228] sm:$0xff] (%p2944_p3) }
 0x1aa   : > { %2345 = vst.msk [vmem:[%s3304_s12 + $0x328] sm:$0xff] %vm352_vm0, %v1471_v39  ;;  %v1898_v39 = vld [vmem:[%s3304_s12 + $0x38] sm:$0xff] (%p2944_p3)  ;;  %1901 = vst [vmem:[%s4063_s23 + $0x40] sm:$0xff] (%p2944_p3), %v1900_v25 }
 0x1ab   : > { %1899 = vst [vmem:[%s4063_s23 + $0x38] sm:$0xff] (%p2944_p3), %v1898_v39  ;;  %2021 = vst [vmem:[%s4063_s23 + $0x420] sm:$0xff] (%p2944_p3), %v2020_v21  ;;  %v2026_v39 = vld [vmem:[%s3304_s12 + $0x238] sm:$0xff] (%p2944_p3) }
 0x1ac   : > { %v935_v27 = vpop.permute.xlu0 %934  ;;  %2023 = vst [vmem:[%s4063_s23 + $0x428] sm:$0xff] (%p2944_p3), %v2022_v59  ;;  %2025 = vst [vmem:[%s4063_s23 + $0x430] sm:$0xff] (%p2944_p3), %v2024_v17 }
 0x1ad   : > { %v905_v45 = vpop.permute.xlu1 %904  ;;  %2302 = vst.msk [vmem:[%s3304_s12 + $0x1d0] sm:$0xff] %vm352_vm0, %v935_v27  ;;  %v1904_v27 = vld [vmem:[%s3304_s12 + $0x50] sm:$0xff] (%p2944_p3)  ;;  %2027 = vst [vmem:[%s4063_s23 + $0x438] sm:$0xff] (%p2944_p3), %v2026_v39 }
 0x1ae   : > { %2287 = vst.msk [vmem:[%s3304_s12 + $0x158] sm:$0xff] %vm352_vm0, %v905_v45  ;;  %v1902_v45 = vld [vmem:[%s3304_s12 + $0x48] sm:$0xff] (%p2944_p3)  ;;  %1905 = vst [vmem:[%s4063_s23 + $0x50] sm:$0xff] (%p2944_p3), %v1904_v27 }
 0x1af   : > { %1903 = vst [vmem:[%s4063_s23 + $0x48] sm:$0xff] (%p2944_p3), %v1902_v45 }
 0x1b0   : > { %v1192_v30 = vpop.permute.xlu0 %1191 }
 0x1b1   : > { %v937_v44 = vpop.permute.xlu1 %936  ;;  %2318 = vst.msk [vmem:[%s3304_s12 + $0x250] sm:$0xff] %vm352_vm0, %v1192_v30  ;;  %v1908_v30 = vld [vmem:[%s3304_s12 + $0x60] sm:$0xff] (%p2944_p3) }
 0x1b2   : > { %2303 = vst.msk [vmem:[%s3304_s12 + $0x1d8] sm:$0xff] %vm352_vm0, %v937_v44  ;;  %v1906_v44 = vld [vmem:[%s3304_s12 + $0x58] sm:$0xff] (%p2944_p3)  ;;  %1909 = vst [vmem:[%s4063_s23 + $0x60] sm:$0xff] (%p2944_p3), %v1908_v30 }
 0x1b3   : > { %1907 = vst [vmem:[%s4063_s23 + $0x58] sm:$0xff] (%p2944_p3), %v1906_v44 }
 0x1b4   : > { %v1224_v6 = vpop.permute.xlu0 %1223 }
 0x1b5   : > { %v1194_v1 = vpop.permute.xlu1 %1193  ;;  %2334 = vst.msk [vmem:[%s3304_s12 + $0x2d0] sm:$0xff] %vm352_vm0, %v1224_v6  ;;  %v1912_v6 = vld [vmem:[%s3304_s12 + $0x70] sm:$0xff] (%p2944_p3) }
 0x1b6   : > { %2319 = vst.msk [vmem:[%s3304_s12 + $0x258] sm:$0xff] %vm352_vm0, %v1194_v1  ;;  %v1910_v1 = vld [vmem:[%s3304_s12 + $0x68] sm:$0xff] (%p2944_p3)  ;;  %1913 = vst [vmem:[%s4063_s23 + $0x70] sm:$0xff] (%p2944_p3), %v1912_v6 }
 0x1b7   : > { %1911 = vst [vmem:[%s4063_s23 + $0x68] sm:$0xff] (%p2944_p3), %v1910_v1 }
 0x1b8   : > { %v899_v43 = vpop.permute.xlu0 %898  ;;  %v2032_v27 = vld [vmem:[%s3304_s12 + $0x250] sm:$0xff] (%p2944_p3) }
 0x1b9   : > { %v1226_v26 = vpop.permute.xlu1 %1225  ;;  %2284 = vst.msk [vmem:[%s3304_s12 + $0x140] sm:$0xff] %vm352_vm0, %v899_v43  ;;  %v1916_v43 = vld [vmem:[%s3304_s12 + $0x80] sm:$0xff] (%p2944_p3)  ;;  %2033 = vst [vmem:[%s4063_s23 + $0x450] sm:$0xff] (%p2944_p3), %v2032_v27 }
 0x1ba   : > { %2335 = vst.msk [vmem:[%s3304_s12 + $0x2d8] sm:$0xff] %vm352_vm0, %v1226_v26  ;;  %v1914_v26 = vld [vmem:[%s3304_s12 + $0x78] sm:$0xff] (%p2944_p3)  ;;  %1917 = vst [vmem:[%s4063_s23 + $0x80] sm:$0xff] (%p2944_p3), %v1916_v43  ;;  %v2044_v43 = vld [vmem:[%s3304_s12 + $0x280] sm:$0xff] (%p2944_p3) }
 0x1bb   : > { %1915 = vst [vmem:[%s4063_s23 + $0x78] sm:$0xff] (%p2944_p3), %v1914_v26  ;;  %2045 = vst [vmem:[%s4063_s23 + $0x480] sm:$0xff] (%p2944_p3), %v2044_v43 }
 0x1bc   : > { %v931_v31 = vpop.permute.xlu0 %930 }
 0x1bd   : > { %v901_v40 = vpop.permute.xlu1 %900  ;;  %2300 = vst.msk [vmem:[%s3304_s12 + $0x1c0] sm:$0xff] %vm352_vm0, %v931_v31  ;;  %v1920_v31 = vld [vmem:[%s3304_s12 + $0x90] sm:$0xff] (%p2944_p3)  ;;  %v2034_v44 = vld [vmem:[%s3304_s12 + $0x258] sm:$0xff] (%p2944_p3) }
 0x1be   : > { %2285 = vst.msk [vmem:[%s3304_s12 + $0x148] sm:$0xff] %vm352_vm0, %v901_v40  ;;  %v1918_v40 = vld [vmem:[%s3304_s12 + $0x88] sm:$0xff] (%p2944_p3)  ;;  %1921 = vst [vmem:[%s4063_s23 + $0x90] sm:$0xff] (%p2944_p3), %v1920_v31  ;;  %v2048_v31 = vld [vmem:[%s3304_s12 + $0x290] sm:$0xff] (%p2944_p3) }
 0x1bf   : > { %1919 = vst [vmem:[%s4063_s23 + $0x88] sm:$0xff] (%p2944_p3), %v1918_v40  ;;  %2035 = vst [vmem:[%s4063_s23 + $0x458] sm:$0xff] (%p2944_p3), %v2034_v44  ;;  %v2046_v40 = vld [vmem:[%s3304_s12 + $0x288] sm:$0xff] (%p2944_p3) }
 0x1c0   : > { %v1188_v15 = vpop.permute.xlu0 %1187  ;;  %2047 = vst [vmem:[%s4063_s23 + $0x488] sm:$0xff] (%p2944_p3), %v2046_v40  ;;  %2049 = vst [vmem:[%s4063_s23 + $0x490] sm:$0xff] (%p2944_p3), %v2048_v31 }
 0x1c1   : > { %v933_v9 = vpop.permute.xlu1 %932  ;;  %2316 = vst.msk [vmem:[%s3304_s12 + $0x240] sm:$0xff] %vm352_vm0, %v1188_v15  ;;  %v1924_v15 = vld [vmem:[%s3304_s12 + $0xa0] sm:$0xff] (%p2944_p3) }
 0x1c2   : > { %2301 = vst.msk [vmem:[%s3304_s12 + $0x1c8] sm:$0xff] %vm352_vm0, %v933_v9  ;;  %v1922_v9 = vld [vmem:[%s3304_s12 + $0x98] sm:$0xff] (%p2944_p3)  ;;  %1925 = vst [vmem:[%s4063_s23 + $0xa0] sm:$0xff] (%p2944_p3), %v1924_v15  ;;  %v2052_v15 = vld [vmem:[%s3304_s12 + $0x2a0] sm:$0xff] (%p2944_p3) }
 0x1c3   : > { %1923 = vst [vmem:[%s4063_s23 + $0x98] sm:$0xff] (%p2944_p3), %v1922_v9  ;;  %v2050_v9 = vld [vmem:[%s3304_s12 + $0x298] sm:$0xff] (%p2944_p3)  ;;  %2053 = vst [vmem:[%s4063_s23 + $0x4a0] sm:$0xff] (%p2944_p3), %v2052_v15 }
 0x1c4   : > { %v1220_v0 = vpop.permute.xlu0 %1219  ;;  %2051 = vst [vmem:[%s4063_s23 + $0x498] sm:$0xff] (%p2944_p3), %v2050_v9 }
 0x1c5   : > { %v1190_v57 = vpop.permute.xlu1 %1189  ;;  %2332 = vst.msk [vmem:[%s3304_s12 + $0x2c0] sm:$0xff] %vm352_vm0, %v1220_v0  ;;  %v1928_v0 = vld [vmem:[%s3304_s12 + $0xb0] sm:$0xff] (%p2944_p3) }
 0x1c6   : > { %2317 = vst.msk [vmem:[%s3304_s12 + $0x248] sm:$0xff] %vm352_vm0, %v1190_v57  ;;  %v1926_v57 = vld [vmem:[%s3304_s12 + $0xa8] sm:$0xff] (%p2944_p3)  ;;  %1929 = vst [vmem:[%s4063_s23 + $0xb0] sm:$0xff] (%p2944_p3), %v1928_v0  ;;  %v2056_v0 = vld [vmem:[%s3304_s12 + $0x2b0] sm:$0xff] (%p2944_p3) }
 0x1c7   : > { %1927 = vst [vmem:[%s4063_s23 + $0xa8] sm:$0xff] (%p2944_p3), %v1926_v57  ;;  %v2054_v57 = vld [vmem:[%s3304_s12 + $0x2a8] sm:$0xff] (%p2944_p3)  ;;  %2057 = vst [vmem:[%s4063_s23 + $0x4b0] sm:$0xff] (%p2944_p3), %v2056_v0 }
 0x1c8   : > { %v911_v7 = vpop.permute.xlu0 %910  ;;  %v2028_v25 = vld [vmem:[%s3304_s12 + $0x240] sm:$0xff] (%p2944_p3)  ;;  %2055 = vst [vmem:[%s4063_s23 + $0x4a8] sm:$0xff] (%p2944_p3), %v2054_v57 }
 0x1c9   : > { %v1222_v53 = vpop.permute.xlu1 %1221  ;;  %2290 = vst.msk [vmem:[%s3304_s12 + $0x170] sm:$0xff] %vm352_vm0, %v911_v7  ;;  %v1932_v7 = vld [vmem:[%s3304_s12 + $0xc0] sm:$0xff] (%p2944_p3)  ;;  %2029 = vst [vmem:[%s4063_s23 + $0x440] sm:$0xff] (%p2944_p3), %v2028_v25 }
 0x1ca   : > { %2333 = vst.msk [vmem:[%s3304_s12 + $0x2c8] sm:$0xff] %vm352_vm0, %v1222_v53  ;;  %v1930_v53 = vld [vmem:[%s3304_s12 + $0xb8] sm:$0xff] (%p2944_p3)  ;;  %1933 = vst [vmem:[%s4063_s23 + $0xc0] sm:$0xff] (%p2944_p3), %v1932_v7 }
 0x1cb   : > { %1931 = vst [vmem:[%s4063_s23 + $0xb8] sm:$0xff] (%p2944_p3), %v1930_v53  ;;  %v2058_v53 = vld [vmem:[%s3304_s12 + $0x2b8] sm:$0xff] (%p2944_p3) }
 0x1cc   : > { %v943_v51 = vpop.permute.xlu0 %942  ;;  %v2060_v7 = vld [vmem:[%s3304_s12 + $0x2c0] sm:$0xff] (%p2944_p3)  ;;  %2059 = vst [vmem:[%s4063_s23 + $0x4b8] sm:$0xff] (%p2944_p3), %v2058_v53 }
 0x1cd   : > { %v1479_v56 = vpop.permute.xlu1 %1478  ;;  %2306 = vst.msk [vmem:[%s3304_s12 + $0x1f0] sm:$0xff] %vm352_vm0, %v943_v51  ;;  %v1936_v51 = vld [vmem:[%s3304_s12 + $0xd0] sm:$0xff] (%p2944_p3)  ;;  %v2030_v45 = vld [vmem:[%s3304_s12 + $0x248] sm:$0xff] (%p2944_p3)  ;;  %2061 = vst [vmem:[%s4063_s23 + $0x4c0] sm:$0xff] (%p2944_p3), %v2060_v7 }
 0x1ce   : > { %2349 = vst.msk [vmem:[%s3304_s12 + $0x348] sm:$0xff] %vm352_vm0, %v1479_v56  ;;  %v1934_v56 = vld [vmem:[%s3304_s12 + $0xc8] sm:$0xff] (%p2944_p3)  ;;  %1937 = vst [vmem:[%s4063_s23 + $0xd0] sm:$0xff] (%p2944_p3), %v1936_v51  ;;  %v2064_v51 = vld [vmem:[%s3304_s12 + $0x2d0] sm:$0xff] (%p2944_p3) }
 0x1cf   : > { %1935 = vst [vmem:[%s4063_s23 + $0xc8] sm:$0xff] (%p2944_p3), %v1934_v56  ;;  %2031 = vst [vmem:[%s4063_s23 + $0x448] sm:$0xff] (%p2944_p3), %v2030_v45 }
 0x1d0   : > { %v1200_v37 = vpop.permute.xlu0 %1199  ;;  %2065 = vst [vmem:[%s4063_s23 + $0x4d0] sm:$0xff] (%p2944_p3), %v2064_v51 }
 0x1d1   : > { %v913_v24 = vpop.permute.xlu1 %912  ;;  %2322 = vst.msk [vmem:[%s3304_s12 + $0x270] sm:$0xff] %vm352_vm0, %v1200_v37  ;;  %v1940_v37 = vld [vmem:[%s3304_s12 + $0xe0] sm:$0xff] (%p2944_p3)  ;;  %v2062_v56 = vld [vmem:[%s3304_s12 + $0x2c8] sm:$0xff] (%p2944_p3) }
 0x1d2   : > { %2291 = vst.msk [vmem:[%s3304_s12 + $0x178] sm:$0xff] %vm352_vm0, %v913_v24  ;;  %v1938_v24 = vld [vmem:[%s3304_s12 + $0xd8] sm:$0xff] (%p2944_p3)  ;;  %1941 = vst [vmem:[%s4063_s23 + $0xe0] sm:$0xff] (%p2944_p3), %v1940_v37 }
 0x1d3   : > { %1939 = vst [vmem:[%s4063_s23 + $0xd8] sm:$0xff] (%p2944_p3), %v1938_v24  ;;  %2063 = vst [vmem:[%s4063_s23 + $0x4c8] sm:$0xff] (%p2944_p3), %v2062_v56  ;;  %v2066_v24 = vld [vmem:[%s3304_s12 + $0x2d8] sm:$0xff] (%p2944_p3) }
 0x1d4   : > { %v1232_v63 = vpop.permute.xlu0 %1231  ;;  %2067 = vst [vmem:[%s4063_s23 + $0x4d8] sm:$0xff] (%p2944_p3), %v2066_v24 }
 0x1d5   : > { %v945_v28 = vpop.permute.xlu1 %944  ;;  %2338 = vst.msk [vmem:[%s3304_s12 + $0x2f0] sm:$0xff] %vm352_vm0, %v1232_v63  ;;  %v1944_v63 = vld [vmem:[%s3304_s12 + $0xf0] sm:$0xff] (%p2944_p3) }
 0x1d6   : > { %2307 = vst.msk [vmem:[%s3304_s12 + $0x1f8] sm:$0xff] %vm352_vm0, %v945_v28  ;;  %v1942_v28 = vld [vmem:[%s3304_s12 + $0xe8] sm:$0xff] (%p2944_p3)  ;;  %1945 = vst [vmem:[%s4063_s23 + $0xf0] sm:$0xff] (%p2944_p3), %v1944_v63 }
 0x1d7   : > { %1943 = vst [vmem:[%s4063_s23 + $0xe8] sm:$0xff] (%p2944_p3), %v1942_v28 }
 0x1d8   : > { %v907_v33 = vpop.permute.xlu0 %906  ;;  %v2040_v6 = vld [vmem:[%s3304_s12 + $0x270] sm:$0xff] (%p2944_p3) }
 0x1d9   : > { %v1202_v12 = vpop.permute.xlu1 %1201  ;;  %2288 = vst.msk [vmem:[%s3304_s12 + $0x160] sm:$0xff] %vm352_vm0, %v907_v33  ;;  %v1948_v33 = vld [vmem:[%s3304_s12 + $0x100] sm:$0xff] (%p2944_p3)  ;;  %2041 = vst [vmem:[%s4063_s23 + $0x470] sm:$0xff] (%p2944_p3), %v2040_v6 }
 0x1da   : > { %2323 = vst.msk [vmem:[%s3304_s12 + $0x278] sm:$0xff] %vm352_vm0, %v1202_v12  ;;  %v1946_v12 = vld [vmem:[%s3304_s12 + $0xf8] sm:$0xff] (%p2944_p3)  ;;  %1949 = vst [vmem:[%s4063_s23 + $0x200] sm:$0xff] (%p2944_p3), %v1948_v33  ;;  %v2076_v33 = vld [vmem:[%s3304_s12 + $0x300] sm:$0xff] (%p2944_p3) }
 0x1db   : > { %1947 = vst [vmem:[%s4063_s23 + $0xf8] sm:$0xff] (%p2944_p3), %v1946_v12  ;;  %2077 = vst [vmem:[%s4063_s23 + $0x600] sm:$0xff] (%p2944_p3), %v2076_v33 }
 0x1dc   : > { %v939_v10 = vpop.permute.xlu0 %938  ;;  %v2072_v63 = vld [vmem:[%s3304_s12 + $0x2f0] sm:$0xff] (%p2944_p3) }
 0x1dd   : > { %v1234_v3 = vpop.permute.xlu1 %1233  ;;  %2304 = vst.msk [vmem:[%s3304_s12 + $0x1e0] sm:$0xff] %vm352_vm0, %v939_v10  ;;  %v1952_v10 = vld [vmem:[%s3304_s12 + $0x110] sm:$0xff] (%p2944_p3)  ;;  %2073 = vst [vmem:[%s4063_s23 + $0x4f0] sm:$0xff] (%p2944_p3), %v2072_v63 }
 0x1de   : > { %2339 = vst.msk [vmem:[%s3304_s12 + $0x2f8] sm:$0xff] %vm352_vm0, %v1234_v3  ;;  %v1950_v3 = vld [vmem:[%s3304_s12 + $0x108] sm:$0xff] (%p2944_p3)  ;;  %1953 = vst [vmem:[%s4063_s23 + $0x210] sm:$0xff] (%p2944_p3), %v1952_v10  ;;  %v2080_v10 = vld [vmem:[%s3304_s12 + $0x310] sm:$0xff] (%p2944_p3) }
 0x1df   : > { %1951 = vst [vmem:[%s4063_s23 + $0x208] sm:$0xff] (%p2944_p3), %v1950_v3  ;;  %v2078_v3 = vld [vmem:[%s3304_s12 + $0x308] sm:$0xff] (%p2944_p3)  ;;  %2081 = vst [vmem:[%s4063_s23 + $0x610] sm:$0xff] (%p2944_p3), %v2080_v10 }
 0x1e0   : > { %v1196_v41 = vpop.permute.xlu0 %1195  ;;  %2079 = vst [vmem:[%s4063_s23 + $0x608] sm:$0xff] (%p2944_p3), %v2078_v3 }
 0x1e1   : > { %v909_v2 = vpop.permute.xlu1 %908  ;;  %2320 = vst.msk [vmem:[%s3304_s12 + $0x260] sm:$0xff] %vm352_vm0, %v1196_v41  ;;  %v1956_v41 = vld [vmem:[%s3304_s12 + $0x120] sm:$0xff] (%p2944_p3)  ;;  %v2042_v26 = vld [vmem:[%s3304_s12 + $0x278] sm:$0xff] (%p2944_p3) }
 0x1e2   : > { %2289 = vst.msk [vmem:[%s3304_s12 + $0x168] sm:$0xff] %vm352_vm0, %v909_v2  ;;  %v1954_v2 = vld [vmem:[%s3304_s12 + $0x118] sm:$0xff] (%p2944_p3)  ;;  %1957 = vst [vmem:[%s4063_s23 + $0x220] sm:$0xff] (%p2944_p3), %v1956_v41  ;;  %v2084_v41 = vld [vmem:[%s3304_s12 + $0x320] sm:$0xff] (%p2944_p3) }
 0x1e3   : > { %1955 = vst [vmem:[%s4063_s23 + $0x218] sm:$0xff] (%p2944_p3), %v1954_v2  ;;  %2043 = vst [vmem:[%s4063_s23 + $0x478] sm:$0xff] (%p2944_p3), %v2042_v26  ;;  %v2082_v2 = vld [vmem:[%s3304_s12 + $0x318] sm:$0xff] (%p2944_p3) }
 0x1e4   : > { %v1228_v16 = vpop.permute.xlu0 %1227  ;;  %2083 = vst [vmem:[%s4063_s23 + $0x618] sm:$0xff] (%p2944_p3), %v2082_v2  ;;  %2085 = vst [vmem:[%s4063_s23 + $0x620] sm:$0xff] (%p2944_p3), %v2084_v41 }
 0x1e5   : > { %v941_v52 = vpop.permute.xlu1 %940  ;;  %2336 = vst.msk [vmem:[%s3304_s12 + $0x2e0] sm:$0xff] %vm352_vm0, %v1228_v16  ;;  %v1960_v16 = vld [vmem:[%s3304_s12 + $0x130] sm:$0xff] (%p2944_p3)  ;;  %v2074_v12 = vld [vmem:[%s3304_s12 + $0x2f8] sm:$0xff] (%p2944_p3) }
 0x1e6   : > { %2305 = vst.msk [vmem:[%s3304_s12 + $0x1e8] sm:$0xff] %vm352_vm0, %v941_v52  ;;  %v1958_v52 = vld [vmem:[%s3304_s12 + $0x128] sm:$0xff] (%p2944_p3)  ;;  %1961 = vst [vmem:[%s4063_s23 + $0x230] sm:$0xff] (%p2944_p3), %v1960_v16  ;;  %v2088_v16 = vld [vmem:[%s3304_s12 + $0x330] sm:$0xff] (%p2944_p3) }
 0x1e7   : > { %1959 = vst [vmem:[%s4063_s23 + $0x228] sm:$0xff] (%p2944_p3), %v1958_v52  ;;  %2075 = vst [vmem:[%s4063_s23 + $0x4f8] sm:$0xff] (%p2944_p3), %v2074_v12  ;;  %v2086_v52 = vld [vmem:[%s3304_s12 + $0x328] sm:$0xff] (%p2944_p3) }
 0x1e8   : > { %v1477_v22 = vpop.permute.xlu0 %1476  ;;  %v2036_v30 = vld [vmem:[%s3304_s12 + $0x260] sm:$0xff] (%p2944_p3)  ;;  %2087 = vst [vmem:[%s4063_s23 + $0x628] sm:$0xff] (%p2944_p3), %v2086_v52  ;;  %2089 = vst [vmem:[%s4063_s23 + $0x630] sm:$0xff] (%p2944_p3), %v2088_v16 }
 0x1e9   : > { %v1198_v54 = vpop.permute.xlu1 %1197  ;;  %2348 = vst.msk [vmem:[%s3304_s12 + $0x340] sm:$0xff] %vm352_vm0, %v1477_v22  ;;  %v1964_v22 = vld [vmem:[%s3304_s12 + $0x140] sm:$0xff] (%p2944_p3)  ;;  %2037 = vst [vmem:[%s4063_s23 + $0x460] sm:$0xff] (%p2944_p3), %v2036_v30 }
 0x1ea   : > { %2321 = vst.msk [vmem:[%s3304_s12 + $0x268] sm:$0xff] %vm352_vm0, %v1198_v54  ;;  %v1962_v54 = vld [vmem:[%s3304_s12 + $0x138] sm:$0xff] (%p2944_p3)  ;;  %1965 = vst [vmem:[%s4063_s23 + $0x240] sm:$0xff] (%p2944_p3), %v1964_v22 }
 0x1eb   : > { %1963 = vst [vmem:[%s4063_s23 + $0x238] sm:$0xff] (%p2944_p3), %v1962_v54  ;;  %v2090_v54 = vld [vmem:[%s3304_s12 + $0x338] sm:$0xff] (%p2944_p3) }
 0x1ec   : > { %v1481_v60 = vpop.permute.xlu0 %1480  ;;  %v2068_v37 = vld [vmem:[%s3304_s12 + $0x2e0] sm:$0xff] (%p2944_p3)  ;;  %2091 = vst [vmem:[%s4063_s23 + $0x638] sm:$0xff] (%p2944_p3), %v2090_v54 }
 0x1ed   : > { %v1230_v46 = vpop.permute.xlu1 %1229  ;;  %2350 = vst.msk [vmem:[%s3304_s12 + $0x350] sm:$0xff] %vm352_vm0, %v1481_v60  ;;  %v1968_v60 = vld [vmem:[%s3304_s12 + $0x150] sm:$0xff] (%p2944_p3)  ;;  %2069 = vst [vmem:[%s4063_s23 + $0x4e0] sm:$0xff] (%p2944_p3), %v2068_v37 }
 0x1ee   : > { %2337 = vst.msk [vmem:[%s3304_s12 + $0x2e8] sm:$0xff] %vm352_vm0, %v1230_v46  ;;  %v1966_v46 = vld [vmem:[%s3304_s12 + $0x148] sm:$0xff] (%p2944_p3)  ;;  %1969 = vst [vmem:[%s4063_s23 + $0x250] sm:$0xff] (%p2944_p3), %v1968_v60 }
 0x1ef   : > { %1967 = vst [vmem:[%s4063_s23 + $0x248] sm:$0xff] (%p2944_p3), %v1966_v46  ;;  %v2094_v46 = vld [vmem:[%s3304_s12 + $0x348] sm:$0xff] (%p2944_p3) }
 0x1f0   : > { %v1485_v5 = vpop.permute.xlu0 %1484  ;;  %v2092_v22 = vld [vmem:[%s3304_s12 + $0x340] sm:$0xff] (%p2944_p3)  ;;  %2095 = vst [vmem:[%s4063_s23 + $0x648] sm:$0xff] (%p2944_p3), %v2094_v46 }
 0x1f1   : > { %v1483_v55 = vpop.permute.xlu1 %1482  ;;  %2352 = vst.msk [vmem:[%s3304_s12 + $0x360] sm:$0xff] %vm352_vm0, %v1485_v5  ;;  %v1972_v5 = vld [vmem:[%s3304_s12 + $0x160] sm:$0xff] (%p2944_p3)  ;;  %v2038_v1 = vld [vmem:[%s3304_s12 + $0x268] sm:$0xff] (%p2944_p3)  ;;  %2093 = vst [vmem:[%s4063_s23 + $0x640] sm:$0xff] (%p2944_p3), %v2092_v22 }
 0x1f2   : > { %2351 = vst.msk [vmem:[%s3304_s12 + $0x358] sm:$0xff] %vm352_vm0, %v1483_v55  ;;  %v1970_v55 = vld [vmem:[%s3304_s12 + $0x158] sm:$0xff] (%p2944_p3)  ;;  %1973 = vst [vmem:[%s4063_s23 + $0x260] sm:$0xff] (%p2944_p3), %v1972_v5 }
 0x1f3   : > { %1971 = vst [vmem:[%s4063_s23 + $0x258] sm:$0xff] (%p2944_p3), %v1970_v55  ;;  %2039 = vst [vmem:[%s4063_s23 + $0x468] sm:$0xff] (%p2944_p3), %v2038_v1 }
 0x1f4   : > { %v1489_v23 = vpop.permute.xlu0 %1488  ;;  %v2096_v60 = vld [vmem:[%s3304_s12 + $0x350] sm:$0xff] (%p2944_p3) }
 0x1f5   : > { %v1487_v50 = vpop.permute.xlu1 %1486  ;;  %2354 = vst.msk [vmem:[%s3304_s12 + $0x370] sm:$0xff] %vm352_vm0, %v1489_v23  ;;  %v1976_v23 = vld [vmem:[%s3304_s12 + $0x170] sm:$0xff] (%p2944_p3)  ;;  %v2070_v28 = vld [vmem:[%s3304_s12 + $0x2e8] sm:$0xff] (%p2944_p3)  ;;  %2097 = vst [vmem:[%s4063_s23 + $0x650] sm:$0xff] (%p2944_p3), %v2096_v60 }
 0x1f6   : > { %2353 = vst.msk [vmem:[%s3304_s12 + $0x368] sm:$0xff] %vm352_vm0, %v1487_v50  ;;  %v1974_v50 = vld [vmem:[%s3304_s12 + $0x168] sm:$0xff] (%p2944_p3)  ;;  %1977 = vst [vmem:[%s4063_s23 + $0x270] sm:$0xff] (%p2944_p3), %v1976_v23 }
 0x1f7   : > { %1975 = vst [vmem:[%s4063_s23 + $0x268] sm:$0xff] (%p2944_p3), %v1974_v50  ;;  %2071 = vst [vmem:[%s4063_s23 + $0x4e8] sm:$0xff] (%p2944_p3), %v2070_v28 }
 0x1f8   : > { %v1493_v14 = vpop.permute.xlu0 %1492  ;;  %v2100_v5 = vld [vmem:[%s3304_s12 + $0x360] sm:$0xff] (%p2944_p3) }
 0x1f9   : > { %v1491_v32 = vpop.permute.xlu1 %1490  ;;  %2356 = vst.msk [vmem:[%s3304_s12 + $0x380] sm:$0xff] %vm352_vm0, %v1493_v14  ;;  %v1980_v14 = vld [vmem:[%s3304_s12 + $0x180] sm:$0xff] (%p2944_p3)  ;;  %v2098_v55 = vld [vmem:[%s3304_s12 + $0x358] sm:$0xff] (%p2944_p3)  ;;  %2101 = vst [vmem:[%s4063_s23 + $0x660] sm:$0xff] (%p2944_p3), %v2100_v5 }
 0x1fa   : > { %2355 = vst.msk [vmem:[%s3304_s12 + $0x378] sm:$0xff] %vm352_vm0, %v1491_v32  ;;  %v1978_v32 = vld [vmem:[%s3304_s12 + $0x178] sm:$0xff] (%p2944_p3)  ;;  %1981 = vst [vmem:[%s4063_s23 + $0x280] sm:$0xff] (%p2944_p3), %v1980_v14 }
 0x1fb   : > { %1979 = vst [vmem:[%s4063_s23 + $0x278] sm:$0xff] (%p2944_p3), %v1978_v32  ;;  %2099 = vst [vmem:[%s4063_s23 + $0x658] sm:$0xff] (%p2944_p3), %v2098_v55 }
 0x1fc   : > { %v1497_v13 = vpop.permute.xlu0 %1496  ;;  %v2104_v23 = vld [vmem:[%s3304_s12 + $0x370] sm:$0xff] (%p2944_p3) }
 0x1fd   : > { %v1495_v61 = vpop.permute.xlu1 %1494  ;;  %2358 = vst.msk [vmem:[%s3304_s12 + $0x390] sm:$0xff] %vm352_vm0, %v1497_v13  ;;  %v1984_v13 = vld [vmem:[%s3304_s12 + $0x190] sm:$0xff] (%p2944_p3)  ;;  %v2102_v50 = vld [vmem:[%s3304_s12 + $0x368] sm:$0xff] (%p2944_p3)  ;;  %2105 = vst [vmem:[%s4063_s23 + $0x670] sm:$0xff] (%p2944_p3), %v2104_v23 }
 0x1fe   : > { %2357 = vst.msk [vmem:[%s3304_s12 + $0x388] sm:$0xff] %vm352_vm0, %v1495_v61  ;;  %v1982_v61 = vld [vmem:[%s3304_s12 + $0x188] sm:$0xff] (%p2944_p3)  ;;  %1985 = vst [vmem:[%s4063_s23 + $0x290] sm:$0xff] (%p2944_p3), %v1984_v13 }
 0x1ff   : > { %1983 = vst [vmem:[%s4063_s23 + $0x288] sm:$0xff] (%p2944_p3), %v1982_v61  ;;  %2103 = vst [vmem:[%s4063_s23 + $0x668] sm:$0xff] (%p2944_p3), %v2102_v50 }
 0x200   : > { %v1501_v34 = vpop.permute.xlu0 %1500  ;;  %v2108_v14 = vld [vmem:[%s3304_s12 + $0x380] sm:$0xff] (%p2944_p3) }
 0x201   : > { %v1499_v35 = vpop.permute.xlu1 %1498  ;;  %2360 = vst.msk [vmem:[%s3304_s12 + $0x3a0] sm:$0xff] %vm352_vm0, %v1501_v34  ;;  %v1988_v34 = vld [vmem:[%s3304_s12 + $0x1a0] sm:$0xff] (%p2944_p3)  ;;  %v2106_v32 = vld [vmem:[%s3304_s12 + $0x378] sm:$0xff] (%p2944_p3)  ;;  %2109 = vst [vmem:[%s4063_s23 + $0x680] sm:$0xff] (%p2944_p3), %v2108_v14 }
 0x202   : > { %2359 = vst.msk [vmem:[%s3304_s12 + $0x398] sm:$0xff] %vm352_vm0, %v1499_v35  ;;  %v1986_v35 = vld [vmem:[%s3304_s12 + $0x198] sm:$0xff] (%p2944_p3)  ;;  %1989 = vst [vmem:[%s4063_s23 + $0x2a0] sm:$0xff] (%p2944_p3), %v1988_v34 }
 0x203   : > { %1987 = vst [vmem:[%s4063_s23 + $0x298] sm:$0xff] (%p2944_p3), %v1986_v35  ;;  %2107 = vst [vmem:[%s4063_s23 + $0x678] sm:$0xff] (%p2944_p3), %v2106_v32 }
 0x204   : > { %v1505_v36 = vpop.permute.xlu0 %1504  ;;  %v2112_v13 = vld [vmem:[%s3304_s12 + $0x390] sm:$0xff] (%p2944_p3) }
 0x205   : > { %v1503_v11 = vpop.permute.xlu1 %1502  ;;  %2362 = vst.msk [vmem:[%s3304_s12 + $0x3b0] sm:$0xff] %vm352_vm0, %v1505_v36  ;;  %v1992_v36 = vld [vmem:[%s3304_s12 + $0x1b0] sm:$0xff] (%p2944_p3)  ;;  %v2110_v61 = vld [vmem:[%s3304_s12 + $0x388] sm:$0xff] (%p2944_p3)  ;;  %2113 = vst [vmem:[%s4063_s23 + $0x690] sm:$0xff] (%p2944_p3), %v2112_v13 }
 0x206   : > { %2361 = vst.msk [vmem:[%s3304_s12 + $0x3a8] sm:$0xff] %vm352_vm0, %v1503_v11  ;;  %v1990_v11 = vld [vmem:[%s3304_s12 + $0x1a8] sm:$0xff] (%p2944_p3)  ;;  %1993 = vst [vmem:[%s4063_s23 + $0x2b0] sm:$0xff] (%p2944_p3), %v1992_v36 }
 0x207   : > { %1991 = vst [vmem:[%s4063_s23 + $0x2a8] sm:$0xff] (%p2944_p3), %v1990_v11  ;;  %2111 = vst [vmem:[%s4063_s23 + $0x688] sm:$0xff] (%p2944_p3), %v2110_v61 }
 0x208   : > { %v1509_v20 = vpop.permute.xlu0 %1508  ;;  %v2116_v34 = vld [vmem:[%s3304_s12 + $0x3a0] sm:$0xff] (%p2944_p3) }
 0x209   : > { %v1507_v58 = vpop.permute.xlu1 %1506  ;;  %2364 = vst.msk [vmem:[%s3304_s12 + $0x3c0] sm:$0xff] %vm352_vm0, %v1509_v20  ;;  %v1996_v20 = vld [vmem:[%s3304_s12 + $0x1c0] sm:$0xff] (%p2944_p3)  ;;  %v2114_v35 = vld [vmem:[%s3304_s12 + $0x398] sm:$0xff] (%p2944_p3)  ;;  %2117 = vst [vmem:[%s4063_s23 + $0x6a0] sm:$0xff] (%p2944_p3), %v2116_v34 }
 0x20a   : > { %2363 = vst.msk [vmem:[%s3304_s12 + $0x3b8] sm:$0xff] %vm352_vm0, %v1507_v58  ;;  %v1994_v58 = vld [vmem:[%s3304_s12 + $0x1b8] sm:$0xff] (%p2944_p3)  ;;  %1997 = vst [vmem:[%s4063_s23 + $0x2c0] sm:$0xff] (%p2944_p3), %v1996_v20 }
 0x20b   : > { %1995 = vst [vmem:[%s4063_s23 + $0x2b8] sm:$0xff] (%p2944_p3), %v1994_v58  ;;  %2115 = vst [vmem:[%s4063_s23 + $0x698] sm:$0xff] (%p2944_p3), %v2114_v35 }
 0x20c   : > { %v1513_v18 = vpop.permute.xlu0 %1512  ;;  %v2120_v36 = vld [vmem:[%s3304_s12 + $0x3b0] sm:$0xff] (%p2944_p3) }
 0x20d   : > { %v1511_v38 = vpop.permute.xlu1 %1510  ;;  %2366 = vst.msk [vmem:[%s3304_s12 + $0x3d0] sm:$0xff] %vm352_vm0, %v1513_v18  ;;  %v2000_v18 = vld [vmem:[%s3304_s12 + $0x1d0] sm:$0xff] (%p2944_p3)  ;;  %v2118_v11 = vld [vmem:[%s3304_s12 + $0x3a8] sm:$0xff] (%p2944_p3)  ;;  %2121 = vst [vmem:[%s4063_s23 + $0x6b0] sm:$0xff] (%p2944_p3), %v2120_v36 }
 0x20e   : > { %2365 = vst.msk [vmem:[%s3304_s12 + $0x3c8] sm:$0xff] %vm352_vm0, %v1511_v38  ;;  %v1998_v38 = vld [vmem:[%s3304_s12 + $0x1c8] sm:$0xff] (%p2944_p3)  ;;  %2001 = vst [vmem:[%s4063_s23 + $0x2d0] sm:$0xff] (%p2944_p3), %v2000_v18 }
 0x20f   : > { %1999 = vst [vmem:[%s4063_s23 + $0x2c8] sm:$0xff] (%p2944_p3), %v1998_v38  ;;  %2119 = vst [vmem:[%s4063_s23 + $0x6a8] sm:$0xff] (%p2944_p3), %v2118_v11 }
 0x210   : > { %v1517_v4 = vpop.permute.xlu0 %1516  ;;  %v2124_v20 = vld [vmem:[%s3304_s12 + $0x3c0] sm:$0xff] (%p2944_p3) }
 0x211   : > { %v1515_v19 = vpop.permute.xlu1 %1514  ;;  %2368 = vst.msk [vmem:[%s3304_s12 + $0x3e0] sm:$0xff] %vm352_vm0, %v1517_v4  ;;  %v2004_v4 = vld [vmem:[%s3304_s12 + $0x1e0] sm:$0xff] (%p2944_p3)  ;;  %v2122_v58 = vld [vmem:[%s3304_s12 + $0x3b8] sm:$0xff] (%p2944_p3)  ;;  %2125 = vst [vmem:[%s4063_s23 + $0x6c0] sm:$0xff] (%p2944_p3), %v2124_v20 }
 0x212   : > { %2367 = vst.msk [vmem:[%s3304_s12 + $0x3d8] sm:$0xff] %vm352_vm0, %v1515_v19  ;;  %v2002_v19 = vld [vmem:[%s3304_s12 + $0x1d8] sm:$0xff] (%p2944_p3)  ;;  %2005 = vst [vmem:[%s4063_s23 + $0x2e0] sm:$0xff] (%p2944_p3), %v2004_v4 }
 0x213   : > { %2003 = vst [vmem:[%s4063_s23 + $0x2d8] sm:$0xff] (%p2944_p3), %v2002_v19  ;;  %2123 = vst [vmem:[%s4063_s23 + $0x6b8] sm:$0xff] (%p2944_p3), %v2122_v58 }
 0x214   : > { %v1521_v48 = vpop.permute.xlu0 %1520  ;;  %v2128_v18 = vld [vmem:[%s3304_s12 + $0x3d0] sm:$0xff] (%p2944_p3) }
 0x215   : > { %v1519_v8 = vpop.permute.xlu1 %1518  ;;  %2370 = vst.msk [vmem:[%s3304_s12 + $0x3f0] sm:$0xff] %vm352_vm0, %v1521_v48  ;;  %v2008_v48 = vld [vmem:[%s3304_s12 + $0x1f0] sm:$0xff] (%p2944_p3)  ;;  %v2126_v38 = vld [vmem:[%s3304_s12 + $0x3c8] sm:$0xff] (%p2944_p3)  ;;  %2129 = vst [vmem:[%s4063_s23 + $0x6d0] sm:$0xff] (%p2944_p3), %v2128_v18 }
 0x216   : > { %2369 = vst.msk [vmem:[%s3304_s12 + $0x3e8] sm:$0xff] %vm352_vm0, %v1519_v8  ;;  %1595 = sbr.rel (!%p2944_p3) target bundleno = 547 (0x223), region = 36  ;;  %v2006_v8 = vld [vmem:[%s3304_s12 + $0x1e8] sm:$0xff] (%p2944_p3)  ;;  %2009 = vst [vmem:[%s4063_s23 + $0x2f0] sm:$0xff] (%p2944_p3), %v2008_v48 }
 0x217   : > { %2007 = vst [vmem:[%s4063_s23 + $0x2e8] sm:$0xff] (%p2944_p3), %v2006_v8  ;;  %2127 = vst [vmem:[%s4063_s23 + $0x6c8] sm:$0xff] (%p2944_p3), %v2126_v38 }
 0x218   : > { %v2132_v4 = vld [vmem:[%s3304_s12 + $0x3e0] sm:$0xff] (%p2944_p3) }
 0x219   : > { %v1523_v42 = vpop.permute.xlu1 %1522  ;;  %v2130_v19 = vld [vmem:[%s3304_s12 + $0x3d8] sm:$0xff] (%p2944_p3)  ;;  %2133 = vst [vmem:[%s4063_s23 + $0x6e0] sm:$0xff] (%p2944_p3), %v2132_v4 }
 0x21a   : > { %2371 = vst.msk [vmem:[%s3304_s12 + $0x3f8] sm:$0xff] %vm352_vm0, %v1523_v42  ;;  %v2010_v42 = vld [vmem:[%s3304_s12 + $0x1f8] sm:$0xff] (%p2944_p3)  ;;  %2131 = vst [vmem:[%s4063_s23 + $0x6d8] sm:$0xff] (%p2944_p3), %v2130_v19 }
 0x21b   : > { %2011 = vst [vmem:[%s4063_s23 + $0x2f8] sm:$0xff] %v2010_v42 }
 0x21c   : > { %v2136_v48 = vld [vmem:[%s3304_s12 + $0x3f0] sm:$0xff] }
 0x21d   : > { %v2134_v8 = vld [vmem:[%s3304_s12 + $0x3e8] sm:$0xff]  ;;  %2137 = vst [vmem:[%s4063_s23 + $0x6f0] sm:$0xff] %v2136_v48 }
 0x21e   : > { %2135 = vst [vmem:[%s4063_s23 + $0x6e8] sm:$0xff] %v2134_v8 }
 0x221   : > { %v2138_v42 = vld [vmem:[%s3304_s12 + $0x3f8] sm:$0xff] }
 0x222   : > { %2139 = vst [vmem:[%s4063_s23 + $0x6f8] sm:$0xff] %v2138_v42 }
 0x223 PF: > { %s13_s16 = sadd.s32 1, %s2887_s16   ;;  %s4414_s12 = smov %s2875_s13 }
 0x224   : > { %p10_p9 = scmp.ge.s32.totalorder %s13_s16, 4   ;;  %s4415_s13 = smov %s2953_s22 }
 0x225   : > { %s4416_s14 = smov %s2883_s15  ;;  %s4417_s15 = smov %s4419_s18 }
 0x226   :  { %12 = sbr.rel (!%p10_p9) target bundleno = 3 (0x3), region = 109 }

</bundles_post_ra>
